<compile_context>
chip_gen: v7x
topology: tpu7x:2x2x1
jax: 0.10.0
libtpu: 0.0.40
codegen_flags: <defaults>
</compile_context>

<pallas_src>
import jax
import jax.numpy as jnp
from jax.experimental import pallas as pl
from jax.experimental.pallas import tpu as pltpu


_TILE_CO = 128  # lane-dense Cout tile (multiple of the 128-lane vreg width)


def _make_conv_kernel(KH, KW, Cin, TR, Wo, with_residual):
    """Build a fused conv+bias(+alpha*y)+ReLU kernel specialized on statics."""
    K = KH * KW * Cin

    def _compute(x_ref, w_ref, b_ref, o_ref, patch_ref, y_ref, alpha_ref):
        # First output row handled by this grid step (rows row0 .. row0+TR-1).
        row0 = pl.multiple_of(pl.program_id(1) * TR, TR)

        # im2col: gather the KH*KW shifted windows of the padded input into one
        # VMEM slab so the whole tile is a single MXU matmul with
        # K = KH*KW*Cin (instead of KH*KW tiny K=Cin matmuls).
        for kh in range(KH):
            for kw in range(KW):
                c0 = (kh * KW + kw) * Cin
                patch_ref[:, :, c0:c0 + Cin] = x_ref[
                    0, pl.ds(row0 + kh, TR), kw:kw + Wo, :]

        patches = patch_ref[...].reshape(TR * Wo, K)              # bf16
        acc = jnp.dot(patches, w_ref[...],                        # MXU
                      preferred_element_type=jnp.float32)         # f32 accum
        acc = acc + b_ref[...]                                    # bias (1, CO)
        if with_residual:
            acc = acc + alpha_ref[0] * y_ref[0]                   # + alpha * y
        o_ref[0] = jnp.maximum(acc, 0.0).astype(o_ref.dtype)      # ReLU

    if with_residual:
        def kernel(alpha_ref, x_ref, w_ref, b_ref, y_ref, o_ref, patch_ref):
            _compute(x_ref, w_ref, b_ref, o_ref, patch_ref, y_ref, alpha_ref)
    else:
        def kernel(x_ref, w_ref, b_ref, o_ref, patch_ref):
            _compute(x_ref, w_ref, b_ref, o_ref, patch_ref, None, None)
    return kernel


def fused_conv_bias_add_activation(x_nchw, w_oihw, bias, y_nchw=None,
                                   alpha=1.0, padding=1):
    """NCHW/OIHW in, NCHW out: ReLU(conv2d(x, W) + bias + alpha * y)."""
    N, Cin, H, W = x_nchw.shape
    Cout, Cin_w, KH, KW = w_oihw.shape
    assert Cin_w == Cin, "channel mismatch between x and W"
    # Proper output geometry (stride 1).  Fixes the old hard-coded (H, W).
    Ho = H + 2 * padding - KH + 1
    Wo = W + 2 * padding - KW + 1
    assert Ho > 0 and Wo > 0, "invalid conv geometry"
    # TODO(synk): stride>1 / dilated / grouped conv variants are not implemented
    # (the module under test uses a stride-1 'same' conv).

    CO_pad = pl.cdiv(Cout, _TILE_CO) * _TILE_CO
    K = KH * KW * Cin
    Hp, Wp = H + 2 * padding, W + 2 * padding

    # Row block: largest that divides Ho and keeps a single f32 out tile small
    # (double-buffered y+out stay far below v7x's 64 MiB VMEM).
    TR = Ho
    tile_budget = 8 * 1024 * 1024
    for cand in (32, 16, 8, 4, 2, 1):
        if Ho % cand == 0 and cand * Wo * CO_pad * 4 <= tile_budget:
            TR = cand
            break

    # ---------------- layout glue (plain JAX) ----------------
    x_nhwc = jnp.transpose(x_nchw, (0, 2, 3, 1))
    x_pad = jnp.pad(x_nhwc,
                    ((0, 0), (padding, padding), (padding, padding), (0, 0)))
    x_pad = x_pad.astype(jnp.bfloat16)          # bf16 MXU operand, half the DMA

    # Weights flattened once to (KH*KW*Cin, Cout), Cout zero-padded to 128.
    w2d = jnp.transpose(w_oihw, (2, 3, 1, 0)).reshape(K, Cout)
    w2d = jnp.pad(w2d, ((0, 0), (0, CO_pad - Cout))).astype(jnp.bfloat16)
    b2d = jnp.pad(bias.astype(jnp.float32), (0, CO_pad - Cout)).reshape(1, CO_pad)

    with_residual = y_nchw is not None

    grid = (N, Ho // TR, CO_pad // _TILE_CO)
    # x: one padded image per batch element; block index constant over (r, c)
    # so it is DMA'd once per n and reused by every row/Cout step.
    x_spec = pl.BlockSpec((1, Hp, Wp, Cin), lambda n, r, c: (n, 0, 0, 0))
    # Weights / bias resident (constant block over the whole grid per Cout tile).
    w_spec = pl.BlockSpec((K, _TILE_CO), lambda n, r, c: (0, c))
    b_spec = pl.BlockSpec((1, _TILE_CO), lambda n, r, c: (0, c))
    # y / out viewed as (N, Ho*Wo, CO_pad): block (1, TR*Wo, 128) is
    # sublane/lane dense -> unmasked vector stores.
    yo_spec = pl.BlockSpec((1, TR * Wo, _TILE_CO), lambda n, r, c: (n, r, c))

    kernel = _make_conv_kernel(KH, KW, Cin, TR, Wo, with_residual)

    if with_residual:
        assert y_nchw.shape == (N, Cout, Ho, Wo), "residual shape mismatch"
        y_nhwc = jnp.transpose(y_nchw, (0, 2, 3, 1)).astype(jnp.float32)
        y_flat = jnp.pad(y_nhwc, ((0, 0), (0, 0), (0, 0), (0, CO_pad - Cout)))
        y_flat = y_flat.reshape(N, Ho * Wo, CO_pad)
        alpha_arr = jnp.full((1,), alpha, dtype=jnp.float32)
        operands = (alpha_arr, x_pad, w2d, b2d, y_flat)
        in_specs = [pl.BlockSpec(memory_space=pltpu.MemorySpace.SMEM),  # alpha
                    x_spec, w_spec, b_spec, yo_spec]
    else:
        # No residual: no zeros tensor is built or DMA'd, no useless FMA.
        operands = (x_pad, w2d, b2d)
        in_specs = [x_spec, w_spec, b_spec]

    out_flat = pl.pallas_call(
        kernel,
        out_shape=jax.ShapeDtypeStruct((N, Ho * Wo, CO_pad), jnp.float32),
        grid=grid,
        in_specs=in_specs,
        out_specs=yo_spec,
        scratch_shapes=[pltpu.VMEM((TR, Wo, K), jnp.bfloat16)],   # im2col slab
        compiler_params=pltpu.CompilerParams(
            dimension_semantics=("parallel", "parallel", "arbitrary"),
            vmem_limit_bytes=32 * 1024 * 1024),
    )(*operands)

    out = out_flat.reshape(N, Ho, Wo, CO_pad)[:, :, :, :Cout]
    return jnp.transpose(out, (0, 3, 1, 2))                      # back to NCHW


def _reference(x_nchw, w_oihw, bias, y_nchw, alpha, padding=1):
    """Pure-JAX reference with the same bf16 rounding of the MXU operands."""
    xb = x_nchw.astype(jnp.bfloat16).astype(jnp.float32)
    wb = w_oihw.astype(jnp.bfloat16).astype(jnp.float32)
    conv = jax.lax.conv_general_dilated(
        xb, wb, window_strides=(1, 1),
        padding=((padding, padding), (padding, padding)),
        dimension_numbers=("NCHW", "OIHW", "NCHW"),
        precision=jax.lax.Precision.HIGHEST)
    out = conv + bias.reshape(1, -1, 1, 1)
    if y_nchw is not None:
        out = out + alpha * y_nchw
    return jnp.maximum(out, 0.0)


if __name__ == "__main__":
    key = jax.random.PRNGKey(0)
    kx, kw_key, kb, ky = jax.random.split(key, 4)

    N, Cin, H, W = 2, 4, 16, 16
    Cout, KH, KW = 8, 3, 3
    alpha = 0.5

    x = jax.random.normal(kx, (N, Cin, H, W), jnp.float32)
    w = jax.random.normal(kw_key, (Cout, Cin, KH, KW), jnp.float32) * 0.1
    b = jax.random.normal(kb, (Cout,), jnp.float32)
    y = jax.random.normal(ky, (N, Cout, H, W), jnp.float32)

    fused = jax.jit(fused_conv_bias_add_activation, static_argnames=("padding",))

    # Variant 1: with residual (y, alpha).
    out = jax.block_until_ready(fused(x, w, b, y, alpha))
    ref = _reference(x, w, b, y, alpha, padding=1)
    assert out.shape == (N, Cout, H, W)
    assert jnp.allclose(out, ref, atol=1e-2, rtol=1e-2), "mismatch (residual path)"

    # Variant 2: no residual (no zeros tensor is DMA'd).
    out2 = jax.block_until_ready(fused(x, w, b))
    ref2 = _reference(x, w, b, None, 1.0, padding=1)
    assert jnp.allclose(out2, ref2, atol=1e-2, rtol=1e-2), "mismatch (no residual)"

    print("KERNEL_OK")
</pallas_src>

<mosaic_0001>
module attributes {stable_mosaic.version = 11 : i64} {
  func.func @kernel(%arg0: i32, %arg1: i32, %arg2: i32, %arg3: memref<1xf32, #tpu.memory_space<smem>>, %arg4: memref<1x18x18x4xbf16, #tpu.memory_space<vmem>>, %arg5: memref<36x128xbf16, #tpu.memory_space<vmem>>, %arg6: memref<1x128xf32, #tpu.memory_space<vmem>>, %arg7: memref<1x256x128xf32, #tpu.memory_space<vmem>>, %arg8: memref<1x256x128xf32, #tpu.memory_space<vmem>>, %arg9: memref<16x16x36xbf16, #tpu.memory_space<vmem>>) attributes {dimension_semantics = [#tpu.dimension_semantics<parallel>, #tpu.dimension_semantics<parallel>, #tpu.dimension_semantics<arbitrary>], iteration_bounds = array<i64: 2, 1, 1>, scalar_prefetch = 0 : i64, scratch_operands = 1 : i64, tpu.core_type = #tpu.core_type<tc>, window_params = [{transform_indices = @transform_0, window_bounds = array<i64: 1>}, {transform_indices = @transform_1, window_bounds = array<i64: 1, 18, 18, 4>}, {transform_indices = @transform_2, window_bounds = array<i64: 36, 128>}, {transform_indices = @transform_3, window_bounds = array<i64: 1, 128>}, {transform_indices = @transform_4, window_bounds = array<i64: 1, 256, 128>}, {transform_indices = @transform_5, window_bounds = array<i64: 1, 256, 128>}]} {
    %c16_i32 = arith.constant 16 : i32
    %0 = arith.muli %arg1, %c16_i32 : i32
    %1 = tpu.assume_multiple %0, 16 : i32
    %c0_i32 = arith.constant 0 : i32
    %2 = arith.addi %1, %c0_i32 : i32
    %c0 = arith.constant 0 : index
    %3 = arith.index_cast %2 : i32 to index
    %c0_0 = arith.constant 0 : index
    %c0_1 = arith.constant 0 : index
    %4 = vector.load %arg4[%c0, %3, %c0_0, %c0_1] : memref<1x18x18x4xbf16, #tpu.memory_space<vmem>>, vector<1x16x16x4xbf16>
    %5 = vector.shape_cast %4 : vector<1x16x16x4xbf16> to vector<16x16x4xbf16>
    %c0_2 = arith.constant 0 : index
    %c0_3 = arith.constant 0 : index
    %c0_4 = arith.constant 0 : index
    %6 = vector.load %arg9[%c0_2, %c0_3, %c0_4] : memref<16x16x36xbf16, #tpu.memory_space<vmem>>, vector<16x16x4xbf16>
    tpu.vector_store %arg9[%c0_2, %c0_3, %c0_4], %5 {strides = array<i32>} : memref<16x16x36xbf16, #tpu.memory_space<vmem>>, vector<16x16x4xbf16>,
    %c0_i32_5 = arith.constant 0 : i32
    %7 = arith.addi %1, %c0_i32_5 : i32
    %c0_6 = arith.constant 0 : index
    %8 = arith.index_cast %7 : i32 to index
    %c1 = arith.constant 1 : index
    %c0_7 = arith.constant 0 : index
    %9 = vector.load %arg4[%c0_6, %8, %c1, %c0_7] : memref<1x18x18x4xbf16, #tpu.memory_space<vmem>>, vector<1x16x16x4xbf16>
    %10 = vector.shape_cast %9 : vector<1x16x16x4xbf16> to vector<16x16x4xbf16>
    %c0_8 = arith.constant 0 : index
    %c0_9 = arith.constant 0 : index
    %c4 = arith.constant 4 : index
    %11 = vector.load %arg9[%c0_8, %c0_9, %c4] : memref<16x16x36xbf16, #tpu.memory_space<vmem>>, vector<16x16x4xbf16>
    tpu.vector_store %arg9[%c0_8, %c0_9, %c4], %10 {strides = array<i32>} : memref<16x16x36xbf16, #tpu.memory_space<vmem>>, vector<16x16x4xbf16>,
    %c0_i32_10 = arith.constant 0 : i32
    %12 = arith.addi %1, %c0_i32_10 : i32
    %c0_11 = arith.constant 0 : index
    %13 = arith.index_cast %12 : i32 to index
    %c2 = arith.constant 2 : index
    %c0_12 = arith.constant 0 : index
    %14 = vector.load %arg4[%c0_11, %13, %c2, %c0_12] : memref<1x18x18x4xbf16, #tpu.memory_space<vmem>>, vector<1x16x16x4xbf16>
    %15 = vector.shape_cast %14 : vector<1x16x16x4xbf16> to vector<16x16x4xbf16>
    %c0_13 = arith.constant 0 : index
    %c0_14 = arith.constant 0 : index
    %c8 = arith.constant 8 : index
    %16 = vector.load %arg9[%c0_13, %c0_14, %c8] : memref<16x16x36xbf16, #tpu.memory_space<vmem>>, vector<16x16x4xbf16>
    tpu.vector_store %arg9[%c0_13, %c0_14, %c8], %15 {strides = array<i32>} : memref<16x16x36xbf16, #tpu.memory_space<vmem>>, vector<16x16x4xbf16>,
    %c1_i32 = arith.constant 1 : i32
    %17 = arith.addi %1, %c1_i32 : i32
    %c0_15 = arith.constant 0 : index
    %18 = arith.index_cast %17 : i32 to index
    %c0_16 = arith.constant 0 : index
    %c0_17 = arith.constant 0 : index
    %19 = vector.load %arg4[%c0_15, %18, %c0_16, %c0_17] : memref<1x18x18x4xbf16, #tpu.memory_space<vmem>>, vector<1x16x16x4xbf16>
    %20 = vector.shape_cast %19 : vector<1x16x16x4xbf16> to vector<16x16x4xbf16>
    %c0_18 = arith.constant 0 : index
    %c0_19 = arith.constant 0 : index
    %c12 = arith.constant 12 : index
    %21 = vector.load %arg9[%c0_18, %c0_19, %c12] : memref<16x16x36xbf16, #tpu.memory_space<vmem>>, vector<16x16x4xbf16>
    tpu.vector_store %arg9[%c0_18, %c0_19, %c12], %20 {strides = array<i32>} : memref<16x16x36xbf16, #tpu.memory_space<vmem>>, vector<16x16x4xbf16>,
    %c1_i32_20 = arith.constant 1 : i32
    %22 = arith.addi %1, %c1_i32_20 : i32
    %c0_21 = arith.constant 0 : index
    %23 = arith.index_cast %22 : i32 to index
    %c1_22 = arith.constant 1 : index
    %c0_23 = arith.constant 0 : index
    %24 = vector.load %arg4[%c0_21, %23, %c1_22, %c0_23] : memref<1x18x18x4xbf16, #tpu.memory_space<vmem>>, vector<1x16x16x4xbf16>
    %25 = vector.shape_cast %24 : vector<1x16x16x4xbf16> to vector<16x16x4xbf16>
    %c0_24 = arith.constant 0 : index
    %c0_25 = arith.constant 0 : index
    %c16 = arith.constant 16 : index
    %26 = vector.load %arg9[%c0_24, %c0_25, %c16] : memref<16x16x36xbf16, #tpu.memory_space<vmem>>, vector<16x16x4xbf16>
    tpu.vector_store %arg9[%c0_24, %c0_25, %c16], %25 {strides = array<i32>} : memref<16x16x36xbf16, #tpu.memory_space<vmem>>, vector<16x16x4xbf16>,
    %c1_i32_26 = arith.constant 1 : i32
    %27 = arith.addi %1, %c1_i32_26 : i32
    %c0_27 = arith.constant 0 : index
    %28 = arith.index_cast %27 : i32 to index
    %c2_28 = arith.constant 2 : index
    %c0_29 = arith.constant 0 : index
    %29 = vector.load %arg4[%c0_27, %28, %c2_28, %c0_29] : memref<1x18x18x4xbf16, #tpu.memory_space<vmem>>, vector<1x16x16x4xbf16>
    %30 = vector.shape_cast %29 : vector<1x16x16x4xbf16> to vector<16x16x4xbf16>
    %c0_30 = arith.constant 0 : index
    %c0_31 = arith.constant 0 : index
    %c20 = arith.constant 20 : index
    %31 = vector.load %arg9[%c0_30, %c0_31, %c20] : memref<16x16x36xbf16, #tpu.memory_space<vmem>>, vector<16x16x4xbf16>
    tpu.vector_store %arg9[%c0_30, %c0_31, %c20], %30 {strides = array<i32>} : memref<16x16x36xbf16, #tpu.memory_space<vmem>>, vector<16x16x4xbf16>,
    %c2_i32 = arith.constant 2 : i32
    %32 = arith.addi %1, %c2_i32 : i32
    %c0_32 = arith.constant 0 : index
    %33 = arith.index_cast %32 : i32 to index
    %c0_33 = arith.constant 0 : index
    %c0_34 = arith.constant 0 : index
    %34 = vector.load %arg4[%c0_32, %33, %c0_33, %c0_34] : memref<1x18x18x4xbf16, #tpu.memory_space<vmem>>, vector<1x16x16x4xbf16>
    %35 = vector.shape_cast %34 : vector<1x16x16x4xbf16> to vector<16x16x4xbf16>
    %c0_35 = arith.constant 0 : index
    %c0_36 = arith.constant 0 : index
    %c24 = arith.constant 24 : index
    %36 = vector.load %arg9[%c0_35, %c0_36, %c24] : memref<16x16x36xbf16, #tpu.memory_space<vmem>>, vector<16x16x4xbf16>
    tpu.vector_store %arg9[%c0_35, %c0_36, %c24], %35 {strides = array<i32>} : memref<16x16x36xbf16, #tpu.memory_space<vmem>>, vector<16x16x4xbf16>,
    %c2_i32_37 = arith.constant 2 : i32
    %37 = arith.addi %1, %c2_i32_37 : i32
    %c0_38 = arith.constant 0 : index
    %38 = arith.index_cast %37 : i32 to index
    %c1_39 = arith.constant 1 : index
    %c0_40 = arith.constant 0 : index
    %39 = vector.load %arg4[%c0_38, %38, %c1_39, %c0_40] : memref<1x18x18x4xbf16, #tpu.memory_space<vmem>>, vector<1x16x16x4xbf16>
    %40 = vector.shape_cast %39 : vector<1x16x16x4xbf16> to vector<16x16x4xbf16>
    %c0_41 = arith.constant 0 : index
    %c0_42 = arith.constant 0 : index
    %c28 = arith.constant 28 : index
    %41 = vector.load %arg9[%c0_41, %c0_42, %c28] : memref<16x16x36xbf16, #tpu.memory_space<vmem>>, vector<16x16x4xbf16>
    tpu.vector_store %arg9[%c0_41, %c0_42, %c28], %40 {strides = array<i32>} : memref<16x16x36xbf16, #tpu.memory_space<vmem>>, vector<16x16x4xbf16>,
    %c2_i32_43 = arith.constant 2 : i32
    %42 = arith.addi %1, %c2_i32_43 : i32
    %c0_44 = arith.constant 0 : index
    %43 = arith.index_cast %42 : i32 to index
    %c2_45 = arith.constant 2 : index
    %c0_46 = arith.constant 0 : index
    %44 = vector.load %arg4[%c0_44, %43, %c2_45, %c0_46] : memref<1x18x18x4xbf16, #tpu.memory_space<vmem>>, vector<1x16x16x4xbf16>
    %45 = vector.shape_cast %44 : vector<1x16x16x4xbf16> to vector<16x16x4xbf16>
    %c0_47 = arith.constant 0 : index
    %c0_48 = arith.constant 0 : index
    %c32 = arith.constant 32 : index
    %46 = vector.load %arg9[%c0_47, %c0_48, %c32] : memref<16x16x36xbf16, #tpu.memory_space<vmem>>, vector<16x16x4xbf16>
    tpu.vector_store %arg9[%c0_47, %c0_48, %c32], %45 {strides = array<i32>} : memref<16x16x36xbf16, #tpu.memory_space<vmem>>, vector<16x16x4xbf16>,
    %c0_49 = arith.constant 0 : index
    %c0_50 = arith.constant 0 : index
    %c0_51 = arith.constant 0 : index
    %47 = vector.load %arg9[%c0_49, %c0_50, %c0_51] : memref<16x16x36xbf16, #tpu.memory_space<vmem>>, vector<16x16x36xbf16>
    %48 = vector.shape_cast %47 : vector<16x16x36xbf16> to vector<256x36xbf16>
    %c0_52 = arith.constant 0 : index
    %c0_53 = arith.constant 0 : index
    %49 = vector.load %arg5[%c0_52, %c0_53] : memref<36x128xbf16, #tpu.memory_space<vmem>>, vector<36x128xbf16>
    %cst = arith.constant dense<0.000000e+00> : vector<256x128xf32>
    %50 = tpu.matmul %48, %49, %cst {dimension_numbers = #tpu.dot_dimension_numbers<[1], [0], [0], [1], [0, 0, 1, 1], [], []>} : vector<256x36xbf16>, vector<36x128xbf16>, vector<256x128xf32> -> vector<256x128xf32>
    %c0_54 = arith.constant 0 : index
    %c0_55 = arith.constant 0 : index
    %51 = vector.load %arg6[%c0_54, %c0_55] : memref<1x128xf32, #tpu.memory_space<vmem>>, vector<1x128xf32>
    %52 = vector.broadcast %51 : vector<1x128xf32> to vector<256x128xf32>
    %53 = arith.addf %50, %52 : vector<256x128xf32>
    %c0_56 = arith.constant 0 : index
    %54 = memref.load %arg3[%c0_56] : memref<1xf32, #tpu.memory_space<smem>>
    %c0_57 = arith.constant 0 : index
    %c0_58 = arith.constant 0 : index
    %c0_59 = arith.constant 0 : index
    %55 = vector.load %arg7[%c0_57, %c0_58, %c0_59] : memref<1x256x128xf32, #tpu.memory_space<vmem>>, vector<1x256x128xf32>
    %56 = vector.shape_cast %55 : vector<1x256x128xf32> to vector<256x128xf32>
    %57 = vector.broadcast %54 : f32 to vector<256x128xf32>
    %58 = arith.mulf %57, %56 : vector<256x128xf32>
    %59 = arith.addf %53, %58 : vector<256x128xf32>
    %cst_60 = arith.constant 0.000000e+00 : f32
    %60 = vector.broadcast %cst_60 : f32 to vector<256x128xf32>
    %61 = arith.maximumf %59, %60 : vector<256x128xf32>
    %c0_61 = arith.constant 0 : index
    %c0_62 = arith.constant 0 : index
    %c0_63 = arith.constant 0 : index
    %62 = vector.load %arg8[%c0_61, %c0_62, %c0_63] : memref<1x256x128xf32, #tpu.memory_space<vmem>>, vector<1x256x128xf32>
    %63 = vector.shape_cast %62 : vector<1x256x128xf32> to vector<256x128xf32>
    %64 = vector.shape_cast %61 : vector<256x128xf32> to vector<1x256x128xf32>
    tpu.vector_store %arg8[%c0_61, %c0_62, %c0_63], %64 {strides = array<i32>} : memref<1x256x128xf32, #tpu.memory_space<vmem>>, vector<1x256x128xf32>,
    return
  }
  func.func @transform_0(%arg0: i32, %arg1: i32, %arg2: i32) -> i32 {
    %c0_i32 = arith.constant 0 : i32
    %c0_i32_0 = arith.constant 0 : i32
    return %c0_i32 : i32
  }
  func.func @transform_1(%arg0: i32, %arg1: i32, %arg2: i32) -> (i32, i32, i32, i32) {
    %c0_i32 = arith.constant 0 : i32
    %c0_i32_0 = arith.constant 0 : i32
    %c0_i32_1 = arith.constant 0 : i32
    %c0_i32_2 = arith.constant 0 : i32
    return %arg0, %c0_i32, %c0_i32_0, %c0_i32_1 : i32, i32, i32, i32
  }
  func.func @transform_2(%arg0: i32, %arg1: i32, %arg2: i32) -> (i32, i32) {
    %c0_i32 = arith.constant 0 : i32
    %c0_i32_0 = arith.constant 0 : i32
    return %c0_i32, %arg2 : i32, i32
  }
  func.func @transform_3(%arg0: i32, %arg1: i32, %arg2: i32) -> (i32, i32) {
    %c0_i32 = arith.constant 0 : i32
    %c0_i32_0 = arith.constant 0 : i32
    return %c0_i32, %arg2 : i32, i32
  }
  func.func @transform_4(%arg0: i32, %arg1: i32, %arg2: i32) -> (i32, i32, i32) {
    %c0_i32 = arith.constant 0 : i32
    return %arg0, %arg1, %arg2 : i32, i32, i32
  }
  func.func @transform_5(%arg0: i32, %arg1: i32, %arg2: i32) -> (i32, i32, i32) {
    %c0_i32 = arith.constant 0 : i32
    return %arg0, %arg1, %arg2 : i32, i32, i32
  }
}

</mosaic_0001>

<bundles_post_ra>
// kernel: fused_conv_bias_add_activation.1
= control target key start
LH: loop header
LB: loop body
LE: loop exit
PB: predicated region body
PF: predicated region fallthrough
CT: control target
= control target key end

     0   :  { %s4531_s20 = smov 0   ;;  %s4533_s21 = smov 0   ;;  %s5361_s0 = inlined_call_operand.<no memory space> [shape: f32[1], index: 0, kind: input, shape index: {}]   ;;  %s5362_s1 = inlined_call_operand.vmem [shape: bf16[2,18,18,4], index: 1, kind: input, shape index: {}]   ;;  %s5363_s2 = inlined_call_operand.vmem [shape: bf16[36,128], index: 2, kind: input, shape index: {}]   ;;  %s5364_s3 = inlined_call_operand.vmem [shape: f32[1,128], index: 3, kind: input, shape index: {}]   ;;  %s5365_s4 = inlined_call_operand.vmem [shape: f32[2,256,128], index: 4, kind: input, shape index: {}]   ;;  %s5366_s5 = inlined_call_operand.vmem [shape: f32[2,256,128], index: 5, kind: output, shape index: {}]  }
   0x1   :  { %10 = sst [smem:[#allocation3]] %s5361_s0  ;;  %s4535_s22 = smov 0  }
   0x2 LB: > { %s35_s0 = sadd.s32 1, %s4484_s21  ;;  %p3599_p0 = scmp.ge.s32.totalorder %s4488_s22, 1  ;;  %s4488_s22 = sphi %s4535_s22, %s16_s22   ;;  %s4484_s21 = sphi %s4533_s21, %s5368_s21   ;;  %s4480_s20 = sphi %s4531_s20, %s5367_s20  }
   0x3   : > { %p37_p1 = scmp.ge.s32.totalorder %s35_s0, 2  ;;  %p250_p2 = scmp.lt.s32.totalorder %s4488_s22, 3 }
   0x5   : > { %s5370_s0 = smov (%p37_p1, %s35_s0), 0  ;;  %p251_p3 = pnand %p3599_p0, %p250_p2 }
   0x6   : > { %p304_p4 = scmp.lt.s32.totalorder (!%p251_p3), %s4480_s20, 1  ;;  %vm1102_vm0 = vcmask (!%p251_p3), 1046528   ;;  %s4490_s27 = smov (!%p251_p3), 12   ;;  %vm668_vm1 = vsmask.f32 (!%p251_p3), 7424  ;;  %vm475_vm2 = vcmask (!%p251_p3), 31744  }
   0x7   : > { %254 = sbr.rel (%p251_p3) target bundleno = 617 (0x269), region = 40  ;;  %s4491_s28 = smov (!%p251_p3), 8   ;;  %vm909_vm3 = vcmask (!%p251_p3), 64544   ;;  %vm1199_vm4 = vcmask (!%p251_p3), 97344   ;;  %vm1380_vm5 = vcmask (!%p251_p3), 130144   ;;  %vm1813_vm6 = vcmask (!%p251_p3), 162944  }
   0x8   : > { %s4492_s29 = smov (!%p251_p3), 4   ;;  %s4493_s30 = smov (!%p251_p3), 16   ;;  %vm2102_vm7 = vcmask (!%p251_p3), 195744   ;;  %vm2283_vm8 = vcmask (!%p251_p3), 228544   ;;  %vm2716_vm9 = vcmask (!%p251_p3), 261344   ;;  %vm3005_vm10 = vcmask (!%p251_p3), 294144  }
   0x9   : > { %s4494_s6 = smov (!%p251_p3), 20   ;;  %s4495_s7 = smov (!%p251_p3), 24   ;;  %vm3065_vm11 = vcmask (!%p251_p3), 293888   ;;  %vm3114_vm12 = vcmask (!%p251_p3), 1041408  }
   0xa   : > { %s4496_s8 = smov (!%p251_p3), 28   ;;  %s4497_s9 = smov (!%p251_p3), 32  }
   0xb   : > { %s3279_s16 = sld [smem:[#allocation3]] (!%p251_p3) }
   0xe   : > { %s5372_s20 = smov (!%p304_p4, %s4480_s20), 1 }
   0xf   : > { %s4190_s23 = smul.u32 216, %s5372_s20  ;;  %s4123_s17 = sshll.u32 %s5372_s20, 8 }
  0x11   : > { %s4555_s26 = scalar_lea.vmem %s5362_s1, %s4190_s23  ;;  %s5208_s23 = scalar_lea.vmem %s5365_s4, %s4123_s17 }
  0x12   : > { %v4223_v0 = vld [vmem:[%s4555_s26 + $0x6c] sm:$0xff]   ;;  %v4225_v2 = vld [vmem:[%s4555_s26 + $0x60] sm:$0xfe]   ;;  %v4226_v3 = vld [vmem:[%s4555_s26 + $0x68] ss:$0 sps:$4 sm:$0x11]  }
  0x13   : > { %v4224_v1 = vld [vmem:[%s4555_s26 + $0xc] sm:$0xff]   ;;  %1348 = vrot.lane.b32.xlu1 %v4223_v0, %s4490_s27  ;;  %v1127_v5 = vrot.slane %v4225_v2, 1  ;;  %v1128_v6 = vrot.slane %v4226_v3, 1  ;;  %v4227_v7 = vld [vmem:[%s4555_s26] sm:$0xfe]   ;;  %v4241_v58 = vld [vmem:[%s4555_s26 + $0x78] sm:$0xff]  }
  0x14   : > { %1332 = vrot.lane.b32.xlu0 %v4224_v1, %s4490_s27  ;;  %v4233_v4 = vld [vmem:[%s4555_s26 + $0xc] sm:$0xff]   ;;  %v4228_v8 = vld [vmem:[%s4555_s26 + $0x8] ss:$0 sps:$4 sm:$0x11]   ;;  %v1103_v11 = vrot.slane %v4227_v7, 1  ;;  %v4235_v26 = vld [vmem:[%s4555_s26] sm:$0xff]  }
  0x15   : > { %v682_v9 = vshrl.u32 %v4233_v4, 16  ;;  %v1129_v10 = vsel %vm1102_vm0, %v1127_v5, %v1128_v6  ;;  %v4229_v12 = vld [vmem:[%s4555_s26 + $0x6c] sm:$0xfe]   ;;  %v684_v13 = vshll.u32 %v4233_v4, 16  ;;  %v1104_v14 = vrot.slane %v4228_v8, 1  ;;  %v4239_v38 = vld [vmem:[%s4555_s26 + $0x60] sm:$0xff]  }
  0x16   : > { %v4230_v15 = vld [vmem:[%s4555_s26 + $0x74] ss:$0 sps:$4 sm:$0x11]   ;;  %v1130_v16 = vrot.slane %v4229_v12, 1  ;;  %v4231_v20 = vld [vmem:[%s4555_s26 + $0xc] sm:$0xfe]  }
  0x17   : > { %1167 = vrot.lane.b32.xlu1 %v1129_v10, %s4491_s28  ;;  %v686_v17 = vrot.slane %v684_v13, 1  ;;  %v1105_v18 = vsel %vm1102_vm0, %v1103_v11, %v1104_v14  ;;  %v1131_v19 = vrot.slane %v4230_v15, 1  ;;  %v4232_v21 = vld [vmem:[%s4555_s26 + $0x14] ss:$0 sps:$4 sm:$0x11]   ;;  %v1106_v23 = vrot.slane %v4231_v20, 1 }
  0x18   : > { %1151 = vrot.lane.b32.xlu0 %v1105_v18, %s4491_s28  ;;  %v1107_v24 = vrot.slane %v4232_v21, 1  ;;  %v4234_v25 = vld [vmem:[%s4555_s26 + $0x14] ss:$0 sps:$4 sm:$0x11]   ;;  %v670_v31 = vshrl.u32 %v4235_v26, 16  ;;  %v672_v32 = vshll.u32 %v4235_v26, 16 }
  0x19   : > { %v1132_v22 = vsel %vm1102_vm0, %v1130_v16, %v1131_v19  ;;  %v687_v27 = vor.u32 %v686_v17, %v682_v9  ;;  %v689_v29 = vshll.u32 %v4234_v25, 16  ;;  %v4236_v30 = vld [vmem:[%s4555_s26 + $0x8] ss:$0 sps:$4 sm:$0x11]   ;;  %v4237_v36 = vld [vmem:[%s4555_s26 + $0x6c] sm:$0xff]   ;;  %v766_v47 = vshrl.u32 %v4239_v38, 16 }
  0x1a   : > { %v1108_v28 = vsel %vm1102_vm0, %v1106_v23, %v1107_v24  ;;  %v674_v34 = vrot.slane %v672_v32, 1  ;;  %v677_v35 = vshll.u32 %v4236_v30, 16  ;;  %v4238_v37 = vld [vmem:[%s4555_s26 + $0x74] ss:$0 sps:$4 sm:$0x11]   ;;  %v778_v42 = vshrl.u32 %v4237_v36, 16 }
  0x1b   : > { %1169 = vrot.lane.b32.xlu1 %v1132_v22, %s4491_s28  ;;  %v691_v33 = vrot.slane %v689_v29, 1  ;;  %v780_v43 = vshll.u32 %v4237_v36, 16  ;;  %v785_v44 = vshll.u32 %v4238_v37, 16  ;;  %v4240_v45 = vld [vmem:[%s4555_s26 + $0x68] ss:$0 sps:$4 sm:$0x11]  }
  0x1c   : > { %1153 = vrot.lane.b32.xlu0 %v1108_v28, %s4491_s28  ;;  %v675_v40 = vor.u32 %v674_v34, %v670_v31  ;;  %v679_v41 = vrot.slane %v677_v35, 1  ;;  %v768_v48 = vshll.u32 %v4239_v38, 16  ;;  %v773_v51 = vshll.u32 %v4240_v45, 16  ;;  %v4243_v53 = vld [vmem:[%s4555_s26 + $0x6c] sm:$0xff]   ;;  %v4242_v62 = vld [vmem:[%s4555_s26 + $0x18] sm:$0xff]  }
  0x1d   : > { %v692_v39 = vsel %vm668_vm1, %v687_v27, %v691_v33  ;;  %v782_v49 = vrot.slane %v780_v43, 1  ;;  %v787_v50 = vrot.slane %v785_v44, 1  ;;  %v4244_v56 = vld [vmem:[%s4555_s26 + $0x74] ss:$0 sps:$4 sm:$0x11]   ;;  %v1670_v59 = vshrl.u32 %v4243_v53, 16 }
  0x1e   : > { %v680_v46 = vsel %vm668_vm1, %v675_v40, %v679_v41  ;;  %v770_v52 = vrot.slane %v768_v48, 1  ;;  %v775_v55 = vrot.slane %v773_v51, 1  ;;  %v1672_v60 = vshll.u32 %v4243_v53, 16  ;;  %v4245_v0 = vld [vmem:[%s4555_s26 + $0xc] sm:$0xff]   ;;  %v4247_v7 = vld [vmem:[%s4555_s26 + $0x78] sm:$0xff]  }
  0x1f   : > { %863 = vrot.lane.b32.xlu1 %v692_v39, %s4492_s29  ;;  %v783_v54 = vor.u32 %v782_v49, %v778_v42  ;;  %v1677_v63 = vshll.u32 %v4244_v56, 16  ;;  %v4246_v3 = vld [vmem:[%s4555_s26 + $0x14] ss:$0 sps:$4 sm:$0x11]   ;;  %v1574_v5 = vshrl.u32 %v4245_v0, 16  ;;  %v1576_v6 = vshll.u32 %v4245_v0, 16 }
  0x20   : > { %861 = vrot.lane.b32.xlu0 %v680_v46, %s4492_s29  ;;  %v771_v57 = vor.u32 %v770_v52, %v766_v47  ;;  %v1674_v2 = vrot.slane %v1672_v60, 1  ;;  %v1581_v9 = vshll.u32 %v4246_v3, 16  ;;  %v4248_v10 = vld [vmem:[%s4555_s26 + $0x80] ss:$0 sps:$4 sm:$0x11]   ;;  %v1682_v12 = vshrl.u32 %v4247_v7, 16 }
  0x21   : > { %v788_v61 = vsel %vm668_vm1, %v783_v54, %v787_v50  ;;  %v1679_v4 = vrot.slane %v1677_v63, 1  ;;  %v1578_v11 = vrot.slane %v1576_v6, 1  ;;  %v1684_v13 = vshll.u32 %v4247_v7, 16  ;;  %v4249_v14 = vld [vmem:[%s4555_s26 + $0x18] sm:$0xff]   ;;  %v4251_v28 = vld [vmem:[%s4555_s26 + $0x6c] sm:$0xfe]  }
  0x22   : > { %v776_v1 = vsel %vm668_vm1, %v771_v57, %v775_v55  ;;  %v1675_v8 = vor.u32 %v1674_v2, %v1670_v59  ;;  %v1583_v16 = vrot.slane %v1581_v9, 1  ;;  %v1689_v17 = vshll.u32 %v4248_v10, 16  ;;  %v4250_v20 = vld [vmem:[%s4555_s26 + $0x20] ss:$0 sps:$4 sm:$0x11]   ;;  %v4263_v49 = vld [vmem:[%s4555_s26 + $0x78] sm:$0xff]  }
  0x23   : > { %879 = vrot.lane.b32.xlu1 %v788_v61, %s4492_s29  ;;  %v1579_v18 = vor.u32 %v1578_v11, %v1574_v5  ;;  %v1686_v19 = vrot.slane %v1684_v13, 1  ;;  %v1586_v21 = vshrl.u32 %v4249_v14, 16  ;;  %v1588_v22 = vshll.u32 %v4249_v14, 16  ;;  %v4252_v29 = vld [vmem:[%s4555_s26 + $0x74] ss:$0 sps:$4 sm:$0x11]  }
  0x24   : > { %877 = vrot.lane.b32.xlu0 %v776_v1, %s4492_s29  ;;  %v1680_v15 = vsel %vm668_vm1, %v1675_v8, %v1679_v4  ;;  %v1691_v23 = vrot.slane %v1689_v17, 1  ;;  %v1593_v27 = vshll.u32 %v4250_v20, 16  ;;  %v2030_v33 = vrot.slane %v4251_v28, 1  ;;  %v4253_v34 = vld [vmem:[%s4555_s26 + $0xc] sm:$0xfe]   ;;  %v4265_v52 = vld [vmem:[%s4555_s26 + $0x18] sm:$0xff]  }
  0x25   : > { %v1584_v24 = vsel %vm668_vm1, %v1579_v18, %v1583_v16  ;;  %v1687_v25 = vor.u32 %v1686_v19, %v1682_v12  ;;  %v1590_v26 = vrot.slane %v1588_v22, 1  ;;  %v2031_v35 = vrot.slane %v4252_v29, 1  ;;  %v4254_v36 = vld [vmem:[%s4555_s26 + $0x14] ss:$0 sps:$4 sm:$0x11]   ;;  %v4259_v53 = vld [vmem:[%s4555_s26 + $0x78] sm:$0xff]  }
  0x26   : > { %v1595_v32 = vrot.slane %v1593_v27, 1  ;;  %v2006_v38 = vrot.slane %v4253_v34, 1  ;;  %v2007_v39 = vrot.slane %v4254_v36, 1  ;;  %v4255_v40 = vld [vmem:[%s4555_s26 + $0x78] sm:$0xfe]   ;;  %v2573_v56 = vshrl.u32 %v4263_v49, 16 }
  0x27   : > { %1350 = vrot.lane.b32.xlu1 %v4241_v58, %s4490_s27  ;;  %v1692_v30 = vsel %vm668_vm1, %v1687_v25, %v1691_v23  ;;  %v1591_v31 = vor.u32 %v1590_v26, %v1586_v21  ;;  %v4256_v41 = vld [vmem:[%s4555_s26 + $0x80] ss:$0 sps:$4 sm:$0x11]   ;;  %v2032_v42 = vsel %vm1102_vm0, %v2030_v33, %v2031_v35  ;;  %v2033_v44 = vrot.slane %v4255_v40, 1  ;;  %v4257_v46 = vld [vmem:[%s4555_s26 + $0x18] sm:$0xfe]  }
  0x28   : > { %1334 = vrot.lane.b32.xlu0 %v4242_v62, %s4490_s27  ;;  %v2008_v43 = vsel %vm1102_vm0, %v2006_v38, %v2007_v39  ;;  %v2034_v45 = vrot.slane %v4256_v41, 1  ;;  %v4258_v47 = vld [vmem:[%s4555_s26 + $0x20] ss:$0 sps:$4 sm:$0x11]   ;;  %v2009_v48 = vrot.slane %v4257_v46, 1  ;;  %v4260_v55 = vld [vmem:[%s4555_s26 + $0x18] sm:$0xff]  }
  0x29   : > { %v1596_v37 = vsel %vm668_vm1, %v1591_v31, %v1595_v32  ;;  %v2010_v51 = vrot.slane %v4258_v47, 1  ;;  %v2575_v57 = vshll.u32 %v4263_v49, 16  ;;  %v4264_v58 = vld [vmem:[%s4555_s26 + $0x80] ss:$0 sps:$4 sm:$0x11]   ;;  %v2477_v59 = vshrl.u32 %v4265_v52, 16 }
  0x2a   : > { %v2035_v50 = vsel %vm1102_vm0, %v2033_v44, %v2034_v45  ;;  %v2479_v61 = vshll.u32 %v4265_v52, 16  ;;  %v4261_v62 = vld [vmem:[%s4555_s26 + $0x84] sm:$0xff]   ;;  %v2580_v63 = vshll.u32 %v4264_v58, 16  ;;  %v4266_v0 = vld [vmem:[%s4555_s26 + $0x20] ss:$0 sps:$4 sm:$0x11]  }
  0x2b   : > { %1781 = vrot.lane.b32.xlu1 %v1680_v15, %s4493_s30  ;;  %v2011_v54 = vsel %vm1102_vm0, %v2009_v48, %v2010_v51  ;;  %v2577_v60 = vrot.slane %v2575_v57, 1  ;;  %v4262_v1 = vld [vmem:[%s4555_s26 + $0x24] sm:$0xff]   ;;  %v2484_v5 = vshll.u32 %v4266_v0, 16  ;;  %v4268_v6 = vld [vmem:[%s4555_s26 + $0x8c] ss:$0 sps:$4 sm:$0x11]  }
  0x2c   : > { %1765 = vrot.lane.b32.xlu0 %v1584_v24, %s4493_s30  ;;  %v2481_v2 = vrot.slane %v2479_v61, 1  ;;  %v4267_v3 = vld [vmem:[%s4555_s26 + $0x84] sm:$0xff]   ;;  %v2582_v4 = vrot.slane %v2580_v63, 1  ;;  %v2592_v13 = vshll.u32 %v4268_v6, 16  ;;  %v4275_v14 = vld [vmem:[%s4555_s26 + $0x78] sm:$0xff]  }
  0x2d   : > { %v4269_v7 = vld [vmem:[%s4555_s26 + $0x24] sm:$0xff]   ;;  %v2578_v8 = vor.u32 %v2577_v60, %v2573_v56  ;;  %v2585_v9 = vshrl.u32 %v4267_v3, 16  ;;  %v2587_v10 = vshll.u32 %v4267_v3, 16  ;;  %v2486_v12 = vrot.slane %v2484_v5, 1  ;;  %v4271_v25 = vld [vmem:[%s4555_s26 + $0x78] sm:$0xfe]  }
  0x2e   : > { %v2482_v11 = vor.u32 %v2481_v2, %v2477_v59  ;;  %v4270_v16 = vld [vmem:[%s4555_s26 + $0x2c] ss:$0 sps:$4 sm:$0x11]   ;;  %v2489_v17 = vshrl.u32 %v4269_v7, 16  ;;  %v2491_v18 = vshll.u32 %v4269_v7, 16  ;;  %v2594_v19 = vrot.slane %v2592_v13, 1 }
  0x2f   : > { %1783 = vrot.lane.b32.xlu1 %v1692_v30, %s4493_s30  ;;  %v2589_v15 = vrot.slane %v2587_v10, 1  ;;  %v790_v20 = vshrl.u32 %v4275_v14, 16  ;;  %v2583_v21 = vsel %vm668_vm1, %v2578_v8, %v2582_v4  ;;  %v2496_v24 = vshll.u32 %v4270_v16, 16  ;;  %v4272_v27 = vld [vmem:[%s4555_s26 + $0x80] ss:$0 sps:$4 sm:$0x11]  }
  0x30   : > { %1767 = vrot.lane.b32.xlu0 %v1596_v37, %s4493_s30  ;;  %v2493_v23 = vrot.slane %v2491_v18, 1  ;;  %v2487_v26 = vsel %vm668_vm1, %v2482_v11, %v2486_v12  ;;  %v792_v28 = vshll.u32 %v4275_v14, 16  ;;  %v2933_v31 = vrot.slane %v4271_v25, 1  ;;  %v4277_v32 = vld [vmem:[%s4555_s26 + $0x18] sm:$0xff]   ;;  %v4279_v51 = vld [vmem:[%s4555_s26 + $0x84] sm:$0xfe]  }
  0x31   : > { %v2590_v22 = vor.u32 %v2589_v15, %v2585_v9  ;;  %v2498_v30 = vrot.slane %v2496_v24, 1  ;;  %v2934_v33 = vrot.slane %v4272_v27, 1  ;;  %v4273_v34 = vld [vmem:[%s4555_s26 + $0x18] sm:$0xfe]   ;;  %v694_v46 = vshrl.u32 %v4277_v32, 16  ;;  %v4283_v52 = vld [vmem:[%s4555_s26 + $0x84] sm:$0xff]  }
  0x32   : > { %v2494_v29 = vor.u32 %v2493_v23, %v2489_v17  ;;  %v4274_v35 = vld [vmem:[%s4555_s26 + $0x20] ss:$0 sps:$4 sm:$0x11]   ;;  %v2909_v38 = vrot.slane %v4273_v34, 1  ;;  %v794_v41 = vrot.slane %v792_v28, 1  ;;  %v696_v47 = vshll.u32 %v4277_v32, 16 }
  0x33   : > { %2070 = vrot.lane.b32.xlu1 %v2032_v42, %s4494_s6  ;;  %v2595_v36 = vsel %vm668_vm1, %v2590_v22, %v2594_v19  ;;  %v2910_v39 = vrot.slane %v4274_v35, 1  ;;  %v4276_v40 = vld [vmem:[%s4555_s26 + $0x80] ss:$0 sps:$4 sm:$0x11]   ;;  %v2935_v44 = vsel %vm1102_vm0, %v2933_v31, %v2934_v33  ;;  %v2936_v56 = vrot.slane %v4279_v51, 1  ;;  %v4285_v57 = vld [vmem:[%s4555_s26 + $0x24] sm:$0xff]  }
  0x34   : > { %2054 = vrot.lane.b32.xlu0 %v2008_v43, %s4494_s6  ;;  %v2499_v37 = vsel %vm668_vm1, %v2494_v29, %v2498_v30  ;;  %v797_v42 = vshll.u32 %v4276_v40, 16  ;;  %v4278_v43 = vld [vmem:[%s4555_s26 + $0x20] ss:$0 sps:$4 sm:$0x11]   ;;  %v795_v45 = vor.u32 %v794_v41, %v790_v20  ;;  %v4281_v61 = vld [vmem:[%s4555_s26 + $0x24] sm:$0xfe]  }
  0x35   : > { %v2911_v48 = vsel %vm1102_vm0, %v2909_v38, %v2910_v39  ;;  %v2912_v0 = vrot.slane %v4281_v61, 1  ;;  %v4284_v2 = vld [vmem:[%s4555_s26 + $0x8c] ss:$0 sps:$4 sm:$0x11]   ;;  %v802_v3 = vshrl.u32 %v4283_v52, 16  ;;  %v804_v4 = vshll.u32 %v4283_v52, 16 }
  0x36   : > { %v799_v49 = vrot.slane %v797_v42, 1  ;;  %v809_v6 = vshll.u32 %v4284_v2, 16  ;;  %v4286_v7 = vld [vmem:[%s4555_s26 + $0x2c] ss:$0 sps:$4 sm:$0x11]   ;;  %v706_v10 = vshrl.u32 %v4285_v57, 16 }
  0x37   : > { %2072 = vrot.lane.b32.xlu1 %v2035_v50, %s4494_s6  ;;  %v701_v50 = vshll.u32 %v4278_v43, 16  ;;  %v806_v9 = vrot.slane %v804_v4, 1  ;;  %v708_v11 = vshll.u32 %v4285_v57, 16  ;;  %v713_v13 = vshll.u32 %v4286_v7, 16  ;;  %v4287_v16 = vld [vmem:[%s4555_s26 + $0x78] sm:$0xfe]  }
  0x38   : > { %2056 = vrot.lane.b32.xlu0 %v2011_v54, %s4494_s6  ;;  %v4280_v54 = vld [vmem:[%s4555_s26 + $0x8c] ss:$0 sps:$4 sm:$0x11]   ;;  %v800_v58 = vsel %vm668_vm1, %v795_v45, %v799_v49  ;;  %v811_v12 = vrot.slane %v809_v6, 1  ;;  %v4289_v23 = vld [vmem:[%s4555_s26 + $0x18] sm:$0xfe]  }
  0x39   : > { %v2937_v60 = vrot.slane %v4280_v54, 1  ;;  %v807_v14 = vor.u32 %v806_v9, %v802_v3  ;;  %v710_v15 = vrot.slane %v708_v11, 1  ;;  %v4288_v17 = vld [vmem:[%s4555_s26 + $0x80] ss:$0 sps:$4 sm:$0x11]   ;;  %v715_v18 = vrot.slane %v713_v13, 1 }
  0x3a   : > { %v1134_v22 = vrot.slane %v4288_v17, 1  ;;  %v4290_v24 = vld [vmem:[%s4555_s26 + $0x20] ss:$0 sps:$4 sm:$0x11]   ;;  %v4299_v27 = vld [vmem:[%s4555_s26 + $0x84] sm:$0xff]   ;;  %v4298_v51 = vld [vmem:[%s4555_s26 + $0x30] sm:$0xff]  }
  0x3b   : > { %2251 = vrot.lane.b32.xlu1 %v4259_v53, %s4495_s7  ;;  %v698_v53 = vrot.slane %v696_v47, 1  ;;  %v2938_v5 = vsel %vm1102_vm0, %v2936_v56, %v2937_v60  ;;  %v812_v19 = vsel %vm668_vm1, %v807_v14, %v811_v12  ;;  %v711_v20 = vor.u32 %v710_v15, %v706_v10  ;;  %v4291_v30 = vld [vmem:[%s4555_s26 + $0x84] sm:$0xfe]   ;;  %v4292_v31 = vld [vmem:[%s4555_s26 + $0x8c] ss:$0 sps:$4 sm:$0x11]  }
  0x3c   : > { %2235 = vrot.lane.b32.xlu0 %v4260_v55, %s4495_s7  ;;  %v703_v55 = vrot.slane %v701_v50, 1  ;;  %v1110_v29 = vrot.slane %v4290_v24, 1  ;;  %v1136_v33 = vrot.slane %v4291_v30, 1  ;;  %v1137_v34 = vrot.slane %v4292_v31, 1  ;;  %v4293_v35 = vld [vmem:[%s4555_s26 + $0x24] sm:$0xfe]  }
  0x3d   : > { %v699_v59 = vor.u32 %v698_v53, %v694_v46  ;;  %v716_v25 = vsel %vm668_vm1, %v711_v20, %v715_v18  ;;  %v1112_v39 = vrot.slane %v4293_v35, 1  ;;  %v1696_v40 = vshll.u32 %v4299_v27, 16  ;;  %v4295_v42 = vld [vmem:[%s4555_s26 + $0x84] sm:$0xff]   ;;  %v4297_v50 = vld [vmem:[%s4555_s26 + $0x90] sm:$0xff]  }
  0x3e   : > { %v1138_v38 = vsel %vm1102_vm0, %v1136_v33, %v1137_v34  ;;  %v4301_v43 = vld [vmem:[%s4555_s26 + $0x24] sm:$0xff]   ;;  %v4302_v53 = vld [vmem:[%s4555_s26 + $0x2c] ss:$0 sps:$4 sm:$0x11]   ;;  %v4313_v30 = vld [vmem:[%s4555_s26 + $0x30] sm:$0xfe]  }
  0x3f   : > { %2253 = vrot.lane.b32.xlu1 %v4261_v62, %s4495_s7  ;;  %v4282_v62 = vld [vmem:[%s4555_s26 + $0x2c] ss:$0 sps:$4 sm:$0x11]   ;;  %v704_v63 = vsel %vm668_vm1, %v699_v59, %v703_v55  ;;  %v1698_v46 = vrot.slane %v1696_v40, 1  ;;  %v1598_v47 = vshrl.u32 %v4301_v43, 16  ;;  %v1600_v49 = vshll.u32 %v4301_v43, 16 }
  0x40   : > { %2237 = vrot.lane.b32.xlu0 %v4262_v1, %s4495_s7  ;;  %v2913_v1 = vrot.slane %v4282_v62, 1  ;;  %v4303_v55 = vld [vmem:[%s4555_s26 + $0x90] sm:$0xff]   ;;  %v4304_v59 = vld [vmem:[%s4555_s26 + $0x98] ss:$0 sps:$4 sm:$0x11]   ;;  %v2015_v34 = vrot.slane %v4313_v30, 1 }
  0x41   : > { %v1602_v54 = vrot.slane %v1600_v49, 1  ;;  %v1706_v60 = vshrl.u32 %v4303_v55, 16  ;;  %v1708_v62 = vshll.u32 %v4303_v55, 16  ;;  %v4306_v2 = vld [vmem:[%s4555_s26 + $0x38] ss:$0 sps:$4 sm:$0x11]  }
  0x42   : > { %v2914_v8 = vsel %vm1102_vm0, %v2912_v0, %v2913_v1  ;;  %v1713_v1 = vshll.u32 %v4304_v59, 16  ;;  %v4307_v12 = vld [vmem:[%s4555_s26 + $0x84] sm:$0xfe]   ;;  %v4308_v13 = vld [vmem:[%s4555_s26 + $0x8c] ss:$0 sps:$4 sm:$0x11]  }
  0x43   : > { %2684 = vrot.lane.b32.xlu1 %v2583_v21, %s4496_s8  ;;  %v1133_v21 = vrot.slane %v4287_v16, 1  ;;  %v1603_v61 = vor.u32 %v1602_v54, %v1598_v47  ;;  %v1710_v3 = vrot.slane %v1708_v62, 1  ;;  %v2036_v16 = vrot.slane %v4307_v12, 1  ;;  %v4309_v17 = vld [vmem:[%s4555_s26 + $0x24] sm:$0xfe]   ;;  %v4315_v40 = vld [vmem:[%s4555_s26 + $0x90] sm:$0xff]  }
  0x44   : > { %2668 = vrot.lane.b32.xlu0 %v2487_v26, %s4496_s8  ;;  %v1109_v26 = vrot.slane %v4289_v23, 1  ;;  %v1715_v7 = vrot.slane %v1713_v1, 1  ;;  %v4310_v20 = vld [vmem:[%s4555_s26 + $0x2c] ss:$0 sps:$4 sm:$0x11]   ;;  %v4319_v23 = vld [vmem:[%s4555_s26 + $0x90] sm:$0xff]  }
  0x45   : > { %v1135_v28 = vsel %vm1102_vm0, %v1133_v21, %v1134_v22  ;;  %v1711_v10 = vor.u32 %v1710_v3, %v1706_v60  ;;  %v2012_v22 = vrot.slane %v4309_v17, 1  ;;  %v2013_v24 = vrot.slane %v4310_v20, 1  ;;  %v4316_v43 = vld [vmem:[%s4555_s26 + $0x30] sm:$0xff]   ;;  %v4322_v47 = vld [vmem:[%s4555_s26 + $0x38] ss:$0 sps:$4 sm:$0x11]  }
  0x46   : > { %v1111_v32 = vsel %vm1102_vm0, %v1109_v26, %v1110_v29  ;;  %v4312_v26 = vld [vmem:[%s4555_s26 + $0x98] ss:$0 sps:$4 sm:$0x11]   ;;  %v2597_v33 = vshrl.u32 %v4319_v23, 16  ;;  %v2599_v35 = vshll.u32 %v4319_v23, 16  ;;  %v4323_v49 = vld [vmem:[%s4555_s26 + $0x9c] sm:$0xff]  }
  0x47   : > { %2686 = vrot.lane.b32.xlu1 %v2595_v36, %s4496_s8  ;;  %v4294_v36 = vld [vmem:[%s4555_s26 + $0x2c] ss:$0 sps:$4 sm:$0x11]   ;;  %v1716_v18 = vsel %vm668_vm1, %v1711_v10, %v1715_v7  ;;  %v2040_v29 = vrot.slane %v4312_v26, 1  ;;  %v2014_v31 = vsel %vm1102_vm0, %v2012_v22, %v2013_v24  ;;  %v2611_v55 = vshll.u32 %v4323_v49, 16  ;;  %v4331_v3 = vld [vmem:[%s4555_s26 + $0x90] sm:$0xff]  }
  0x48   : > { %2670 = vrot.lane.b32.xlu0 %v2499_v37, %s4496_s8  ;;  %v1694_v37 = vshrl.u32 %v4299_v27, 16  ;;  %v1113_v41 = vrot.slane %v4294_v36, 1  ;;  %v4324_v54 = vld [vmem:[%s4555_s26 + $0xa4] ss:$0 sps:$4 sm:$0x11]   ;;  %v2609_v59 = vshrl.u32 %v4323_v49, 16 }
  0x49   : > { %v2616_v60 = vshll.u32 %v4324_v54, 16  ;;  %v4330_v20 = vld [vmem:[%s4555_s26 + $0x38] ss:$0 sps:$4 sm:$0x11]   ;;  %v4342_v49 = vld [vmem:[%s4555_s26 + $0x60] sm:$0xff]  }
  0x4a   : > { %v1114_v45 = vsel %vm1102_vm0, %v1112_v39, %v1113_v41  ;;  %v1699_v56 = vor.u32 %v1698_v46, %v1694_v37  ;;  %v4321_v37 = vld [vmem:[%s4555_s26 + $0x30] sm:$0xff]   ;;  %v2601_v41 = vrot.slane %v2599_v35, 1  ;;  %v2916_v26 = vrot.slane %v4330_v20, 1  ;;  %484 = vst.msk [vmem:[#allocation2 + $0x40] sm:$0xff] %vm475_vm2, %v4342_v49  ;;  %v4361_v49 = vld [vmem:[%s4555_s26 + $0x3c] sm:$0xff]  }
  0x4b   : > { %2973 = vrot.lane.b32.xlu1 %v2935_v44, %s4497_s9  ;;  %v4296_v44 = vld [vmem:[%s4555_s26 + $0x24] sm:$0xff]   ;;  %v4335_v35 = vld [vmem:[%s4555_s26 + $0xc] sm:$0xff]  }
  0x4c   : > { %2957 = vrot.lane.b32.xlu0 %v2911_v48, %s4497_s9  ;;  %v4300_v48 = vld [vmem:[%s4555_s26 + $0x8c] ss:$0 sps:$4 sm:$0x11]   ;;  %477 = vst.msk [vmem:[#allocation2 + $0x8] sm:$0xff] %vm475_vm2, %v4335_v35 }
  0x4d   : > { %v1701_v52 = vshll.u32 %v4300_v48, 16 }
  0x4f   : > { %881 = vrot.lane.b32.xlu1 %v800_v58, %s4492_s29  ;;  %v1703_v57 = vrot.slane %v1701_v52, 1  ;;  %v1605_v58 = vshll.u32 %v4302_v53, 16  ;;  %v2508_v53 = vshll.u32 %v4322_v47, 16  ;;  %v4341_v47 = vld [vmem:[%s4555_s26 + $0x6c] sm:$0xff]  }
  0x50   : > { %865 = vrot.lane.b32.xlu0 %v704_v63, %s4492_s29  ;;  %v4305_v63 = vld [vmem:[%s4555_s26 + $0x30] sm:$0xff]   ;;  %485 = vst.msk [vmem:[#allocation2 + $0x48] sm:$0xff] %vm475_vm2, %v4341_v47  ;;  %v4359_v47 = vld [vmem:[%s4555_s26 + $0x9c] sm:$0xff]  }
  0x51   : > { %v1607_v0 = vrot.slane %v1605_v58, 1  ;;  %v1610_v4 = vshrl.u32 %v4305_v63, 16  ;;  %v1704_v6 = vsel %vm668_vm1, %v1699_v56, %v1703_v57  ;;  %v4325_v56 = vld [vmem:[%s4555_s26 + $0x3c] sm:$0xff]   ;;  %v2602_v57 = vor.u32 %v2601_v41, %v2597_v33  ;;  %v4334_v33 = vld [vmem:[%s4555_s26 + $0x38] ss:$0 sps:$4 sm:$0x11]  }
  0x52   : > { %v2510_v58 = vrot.slane %v2508_v53, 1  ;;  %v2513_v1 = vshrl.u32 %v4325_v56, 16  ;;  %v4336_v41 = vld [vmem:[%s4555_s26] sm:$0xff]  }
  0x53   : > { %2975 = vrot.lane.b32.xlu1 %v2938_v5, %s4497_s9  ;;  %v1612_v5 = vshll.u32 %v4305_v63, 16  ;;  %v1608_v9 = vsel %vm668_vm1, %v1603_v61, %v1607_v0  ;;  %v4326_v61 = vld [vmem:[%s4555_s26 + $0x44] ss:$0 sps:$4 sm:$0x11]   ;;  %v2613_v0 = vrot.slane %v2611_v55, 1  ;;  %476 = vst.msk [vmem:[#allocation2] sm:$0xff] %vm475_vm2, %v4336_v41 }
  0x54   : > { %2959 = vrot.lane.b32.xlu0 %v2914_v8, %s4497_s9  ;;  %v1617_v8 = vshll.u32 %v4306_v2, 16  ;;  %v2515_v2 = vshll.u32 %v4325_v56, 16  ;;  %v4339_v55 = vld [vmem:[%s4555_s26 + $0x3c] sm:$0xfe]  }
  0x55   : > { %v1614_v11 = vrot.slane %v1612_v5, 1  ;;  %v2520_v5 = vshll.u32 %v4326_v61, 16  ;;  %v2614_v12 = vor.u32 %v2613_v0, %v2609_v59  ;;  %v4340_v56 = vld [vmem:[%s4555_s26 + $0x44] ss:$0 sps:$4 sm:$0x11]  }
  0x56   : > { %v1619_v14 = vrot.slane %v1617_v8, 1  ;;  %v2517_v7 = vrot.slane %v2515_v2, 1  ;;  %v4327_v8 = vld [vmem:[%s4555_s26 + $0x90] sm:$0xfe]   ;;  %v2919_v59 = vrot.slane %v4340_v56, 1  ;;  %v1622_v56 = vshrl.u32 %v4361_v49, 16 }
  0x57   : > { %883 = vrot.lane.b32.xlu1 %v812_v19, %s4492_s29  ;;  %v1615_v15 = vor.u32 %v1614_v11, %v1610_v4  ;;  %v2037_v19 = vrot.slane %v4308_v13, 1  ;;  %v2618_v4 = vrot.slane %v2616_v60, 1  ;;  %v2522_v13 = vrot.slane %v2520_v5, 1  ;;  %v4344_v2 = vld [vmem:[%s4555_s26 + $0xa4] ss:$0 sps:$4 sm:$0x11]  }
  0x58   : > { %867 = vrot.lane.b32.xlu0 %v716_v25, %s4492_s29  ;;  %v4311_v25 = vld [vmem:[%s4555_s26 + $0x90] sm:$0xfe]   ;;  %v2939_v17 = vrot.slane %v4327_v8, 1  ;;  %v833_v5 = vshll.u32 %v4344_v2, 16 }
  0x59   : > { %v1620_v21 = vsel %vm668_vm1, %v1615_v15, %v1619_v14  ;;  %v2038_v27 = vsel %vm1102_vm0, %v2036_v16, %v2037_v19  ;;  %v814_v14 = vshrl.u32 %v4331_v3, 16  ;;  %v2518_v16 = vor.u32 %v2517_v7, %v2513_v1  ;;  %v4329_v19 = vld [vmem:[%s4555_s26 + $0x30] sm:$0xfe]  }
  0x5a   : > { %v2915_v23 = vrot.slane %v4329_v19, 1 }
  0x5b   : > { %1171 = vrot.lane.b32.xlu1 %v1135_v28, %s4491_s28  ;;  %v2039_v28 = vrot.slane %v4311_v25, 1  ;;  %v2619_v25 = vsel %vm668_vm1, %v2614_v12, %v2618_v4  ;;  %v2523_v30 = vsel %vm668_vm1, %v2518_v16, %v2522_v13  ;;  %v835_v12 = vrot.slane %v833_v5, 1 }
  0x5c   : > { %1155 = vrot.lane.b32.xlu0 %v1111_v32, %s4491_s28  ;;  %v4314_v32 = vld [vmem:[%s4555_s26 + $0x38] ss:$0 sps:$4 sm:$0x11]  }
  0x5d   : > { %v2016_v36 = vrot.slane %v4314_v32, 1 }
  0x5f   : > { %1173 = vrot.lane.b32.xlu1 %v1138_v38, %s4491_s28  ;;  %v2041_v38 = vsel %vm1102_vm0, %v2039_v28, %v2040_v29  ;;  %v2017_v39 = vsel %vm1102_vm0, %v2015_v34, %v2016_v36 }
  0x60   : > { %1157 = vrot.lane.b32.xlu0 %v1114_v45, %s4491_s28  ;;  %v2503_v45 = vshll.u32 %v4321_v37, 16 }
  0x62   : > { %v2505_v48 = vrot.slane %v2503_v45, 1 }
  0x63   : > { %1352 = vrot.lane.b32.xlu1 %v4295_v42, %s4490_s27  ;;  %v2501_v42 = vshrl.u32 %v4321_v37, 16 }
  0x64   : > { %1336 = vrot.lane.b32.xlu0 %v4296_v44, %s4490_s27  ;;  %v4320_v44 = vld [vmem:[%s4555_s26 + $0x98] ss:$0 sps:$4 sm:$0x11]  }
  0x65   : > { %v2604_v46 = vshll.u32 %v4320_v44, 16  ;;  %v2506_v62 = vor.u32 %v2505_v48, %v2501_v42  ;;  %v2917_v42 = vsel %vm1102_vm0, %v2915_v23, %v2916_v26  ;;  %v4338_v48 = vld [vmem:[%s4555_s26 + $0xa4] ss:$0 sps:$4 sm:$0x11]   ;;  %v4349_v23 = vld [vmem:[%s4555_s26 + $0x30] sm:$0xfe]  }
  0x66   : > { %v2943_v54 = vrot.slane %v4338_v48, 1  ;;  %v4360_v48 = vld [vmem:[%s4555_s26 + $0xa4] ss:$0 sps:$4 sm:$0x11]  }
  0x67   : > { %1354 = vrot.lane.b32.xlu1 %v4297_v50, %s4490_s27  ;;  %v4317_v50 = vld [vmem:[%s4555_s26 + $0x9c] sm:$0xff]   ;;  %v2606_v52 = vrot.slane %v2604_v46, 1  ;;  %v2511_v15 = vsel %vm668_vm1, %v2506_v62, %v2510_v58  ;;  %v2918_v58 = vrot.slane %v4339_v55, 1 }
  0x68   : > { %1338 = vrot.lane.b32.xlu0 %v4298_v51, %s4490_s27  ;;  %v4318_v51 = vld [vmem:[%s4555_s26 + $0x3c] sm:$0xff]  }
  0x69   : > { %v2607_v10 = vsel %vm668_vm1, %v2602_v57, %v2606_v52  ;;  %v4337_v46 = vld [vmem:[%s4555_s26 + $0x9c] sm:$0xfe]   ;;  %v2920_v1 = vsel %vm1102_vm0, %v2918_v58, %v2919_v59 }
  0x6a   : > { %v4343_v52 = vld [vmem:[%s4555_s26 + $0x9c] sm:$0xff]  }
  0x6b   : > { %1785 = vrot.lane.b32.xlu1 %v1704_v6, %s4493_s30  ;;  %v4333_v6 = vld [vmem:[%s4555_s26 + $0x30] sm:$0xff]   ;;  %v826_v62 = vshrl.u32 %v4343_v52, 16  ;;  %v828_v0 = vshll.u32 %v4343_v52, 16  ;;  %v1720_v52 = vshll.u32 %v4359_v47, 16 }
  0x6c   : > { %1769 = vrot.lane.b32.xlu0 %v1608_v9, %s4493_s30  ;;  %v4328_v9 = vld [vmem:[%s4555_s26 + $0x98] ss:$0 sps:$4 sm:$0x11]   ;;  %v718_v24 = vshrl.u32 %v4333_v6, 16  ;;  %v720_v29 = vshll.u32 %v4333_v6, 16 }
  0x6d   : > { %v830_v4 = vrot.slane %v828_v0, 1  ;;  %v4346_v6 = vld [vmem:[%s4555_s26 + $0x44] ss:$0 sps:$4 sm:$0x11]   ;;  %v1722_v59 = vrot.slane %v1720_v52, 1  ;;  %v4376_v52 = vld [vmem:[%s4555_s26 + $0x48] sm:$0xff]  }
  0x6e   : > { %v722_v34 = vrot.slane %v720_v29, 1 }
  0x6f   : > { %1787 = vrot.lane.b32.xlu1 %v1716_v18, %s4493_s30  ;;  %v2940_v18 = vrot.slane %v4328_v9, 1  ;;  %v831_v9 = vor.u32 %v830_v4, %v826_v62  ;;  %v4363_v62 = vld [vmem:[%s4555_s26 + $0xa8] sm:$0xff]  }
  0x70   : > { %1771 = vrot.lane.b32.xlu0 %v1620_v21, %s4493_s30  ;;  %v816_v21 = vshll.u32 %v4331_v3, 16  ;;  %v4345_v3 = vld [vmem:[%s4555_s26 + $0x3c] sm:$0xff]   ;;  %v1730_v4 = vshrl.u32 %v4363_v62, 16  ;;  %v1732_v5 = vshll.u32 %v4363_v62, 16 }
  0x71   : > { %v2941_v36 = vsel %vm1102_vm0, %v2939_v17, %v2940_v18  ;;  %v730_v7 = vshrl.u32 %v4345_v3, 16  ;;  %v732_v8 = vshll.u32 %v4345_v3, 16  ;;  %v4348_v17 = vld [vmem:[%s4555_s26 + $0x98] ss:$0 sps:$4 sm:$0x11]  }
  0x72   : > { %v818_v28 = vrot.slane %v816_v21, 1  ;;  %v1140_v21 = vrot.slane %v4348_v17, 1 }
  0x73   : > { %2074 = vrot.lane.b32.xlu1 %v2038_v27, %s4494_s6  ;;  %v4332_v27 = vld [vmem:[%s4555_s26 + $0x98] ss:$0 sps:$4 sm:$0x11]   ;;  %v734_v13 = vrot.slane %v732_v8, 1 }
  0x74   : > { %2058 = vrot.lane.b32.xlu0 %v2014_v31, %s4494_s6  ;;  %v821_v32 = vshll.u32 %v4332_v27, 16 }
  0x75   : > { %v735_v18 = vor.u32 %v734_v13, %v730_v7 }
  0x77   : > { %2076 = vrot.lane.b32.xlu1 %v2041_v38, %s4494_s6  ;;  %v819_v38 = vor.u32 %v818_v28, %v814_v14  ;;  %v737_v14 = vshll.u32 %v4346_v6, 16  ;;  %v1115_v28 = vrot.slane %v4349_v23, 1  ;;  %v4365_v6 = vld [vmem:[%s4555_s26 + $0x48] sm:$0xff]   ;;  %v4368_v23 = vld [vmem:[%s4555_s26 + $0xa4] ss:$0 sps:$4 sm:$0x11]  }
  0x78   : > { %2060 = vrot.lane.b32.xlu0 %v2017_v39, %s4494_s6  ;;  %v823_v39 = vrot.slane %v821_v32, 1 }
  0x79   : > { %v739_v19 = vrot.slane %v737_v14, 1  ;;  %v1734_v14 = vrot.slane %v1732_v5, 1 }
  0x7b   : > { %2255 = vrot.lane.b32.xlu1 %v4315_v40, %s4495_s7  ;;  %v725_v40 = vshll.u32 %v4334_v33, 16  ;;  %v4353_v33 = vld [vmem:[%s4555_s26 + $0x3c] sm:$0xfe]  }
  0x7c   : > { %2239 = vrot.lane.b32.xlu0 %v4316_v43, %s4495_s7  ;;  %v723_v43 = vor.u32 %v722_v34, %v718_v24  ;;  %v4350_v24 = vld [vmem:[%s4555_s26 + $0x38] ss:$0 sps:$4 sm:$0x11]  }
  0x7d   : > { %v727_v45 = vrot.slane %v725_v40, 1  ;;  %v1116_v29 = vrot.slane %v4350_v24, 1 }
  0x7f   : > { %2257 = vrot.lane.b32.xlu1 %v4317_v50, %s4495_s7  ;;  %v824_v50 = vsel %vm668_vm1, %v819_v38, %v823_v39  ;;  %v728_v53 = vsel %vm668_vm1, %v723_v43, %v727_v45  ;;  %v1118_v38 = vrot.slane %v4353_v33, 1  ;;  %v4355_v39 = vld [vmem:[%s4555_s26 + $0x9c] sm:$0xff]  }
  0x80   : > { %2241 = vrot.lane.b32.xlu0 %v4318_v51, %s4495_s7  ;;  %v2942_v51 = vrot.slane %v4337_v46, 1  ;;  %v4357_v46 = vld [vmem:[%s4555_s26 + $0xa8] sm:$0xff]  }
  0x82   : > { %v2944_v61 = vsel %vm1102_vm0, %v2942_v51, %v2943_v54  ;;  %v1718_v51 = vshrl.u32 %v4359_v47, 16  ;;  %v4362_v54 = vld [vmem:[%s4555_s26 + $0x44] ss:$0 sps:$4 sm:$0x11]  }
  0x83   : > { %2688 = vrot.lane.b32.xlu1 %v2607_v10, %s4496_s8 }
  0x84   : > { %2672 = vrot.lane.b32.xlu0 %v2511_v15, %s4496_s8  ;;  %v4347_v15 = vld [vmem:[%s4555_s26 + $0x90] sm:$0xfe]   ;;  %v1723_v2 = vor.u32 %v1722_v59, %v1718_v51  ;;  %v4383_v59 = vld [vmem:[%s4555_s26 + $0xb0] ss:$0 sps:$4 sm:$0x11]  }
  0x85   : > { %v4755_v63 = vpop.permute.xlu1 %1348  ;;  %v1139_v20 = vrot.slane %v4347_v15, 1  ;;  %v1634_v15 = vshrl.u32 %v4365_v6, 16 }
  0x86   : > { %v4764_v11 = vpop.permute.xlu0 %1332 }
  0x87   : > { %2690 = vrot.lane.b32.xlu1 %v2619_v25, %s4496_s8  ;;  %v740_v25 = vsel %vm668_vm1, %v735_v18, %v739_v19  ;;  %v1735_v19 = vor.u32 %v1734_v14, %v1730_v4 }
  0x88   : > { %2674 = vrot.lane.b32.xlu0 %v2523_v30, %s4496_s8  ;;  %v4351_v30 = vld [vmem:[%s4555_s26 + $0x9c] sm:$0xfe]  }
  0x89   : > { %v4770_v22 = vpop.permute.xlu1 %1167  ;;  %v1142_v32 = vrot.slane %v4351_v30, 1  ;;  %v4369_v30 = vld [vmem:[%s4555_s26 + $0x3c] sm:$0xfe]  }
  0x8a   : > { %v1152_v31 = vpop.permute.xlu0 %1151 }
  0x8b   : > { %2977 = vrot.lane.b32.xlu1 %v2941_v36, %s4497_s9  ;;  %v4354_v36 = vld [vmem:[%s4555_s26 + $0x44] ss:$0 sps:$4 sm:$0x11]  }
  0x8c   : > { %2961 = vrot.lane.b32.xlu0 %v2917_v42, %s4497_s9  ;;  %v1119_v41 = vrot.slane %v4354_v36, 1  ;;  %v4356_v42 = vld [vmem:[%s4555_s26 + $0x3c] sm:$0xff]   ;;  %v4371_v36 = vld [vmem:[%s4555_s26 + $0xa8] sm:$0xfe]  }
  0x8d   : > { %v1170_v37 = vpop.permute.xlu1 %1169 }
  0x8e   : > { %v1154_v44 = vpop.permute.xlu0 %1153  ;;  %v1120_v43 = vsel %vm1102_vm0, %v1118_v38, %v1119_v41 }
  0x8f   : > { %885 = vrot.lane.b32.xlu1 %v824_v50, %s4492_s29  ;;  %v4358_v50 = vld [vmem:[%s4555_s26 + $0x48] sm:$0xff]  }
  0x90   : > { %869 = vrot.lane.b32.xlu0 %v728_v53, %s4492_s29  ;;  %v1725_v53 = vshll.u32 %v4360_v48, 16 }
  0x91   : > { %v864_v57 = vpop.permute.xlu1 %863 }
  0x92   : > { %911 = vst.msk [vmem:[#allocation2 + $0x8] sm:$0xff] %vm909_vm3, %v864_v57  ;;  %v862_v60 = vpop.permute.xlu0 %861  ;;  %v1624_v57 = vshll.u32 %v4361_v49, 16  ;;  %v4375_v49 = vld [vmem:[%s4555_s26 + $0xa8] sm:$0xff]  }
  0x93   : > { %1201 = vst.msk [vmem:[#allocation2 + $0x8] sm:$0xff] %vm1199_vm4, %v1154_v44  ;;  %2979 = vrot.lane.b32.xlu1 %v2944_v61, %s4497_s9  ;;  %v1629_v61 = vshll.u32 %v4362_v54, 16  ;;  %v4380_v54 = vld [vmem:[%s4555_s26 + $0x18] sm:$0xff]  }
  0x94   : > { %910 = vst.msk [vmem:[#allocation2] sm:$0xff] %vm909_vm3, %v862_v60  ;;  %2963 = vrot.lane.b32.xlu0 %v2920_v1, %s4497_s9  ;;  %v1727_v60 = vrot.slane %v1725_v53, 1  ;;  %v1626_v0 = vrot.slane %v1624_v57, 1  ;;  %v4364_v1 = vld [vmem:[%s4555_s26 + $0xb0] ss:$0 sps:$4 sm:$0x11]  }
  0x95   : > { %1200 = vst.msk [vmem:[#allocation2] sm:$0xff] %vm1199_vm4, %v1152_v31  ;;  %v880_v10 = vpop.permute.xlu1 %879  ;;  %v4352_v31 = vld [vmem:[%s4555_s26 + $0xa4] ss:$0 sps:$4 sm:$0x11]   ;;  %v1631_v3 = vrot.slane %v1629_v61, 1  ;;  %v4377_v57 = vld [vmem:[%s4555_s26 + $0xb4] sm:$0xff]  }
  0x96   : > { %1381 = vst.msk [vmem:[#allocation2] sm:$0xff] %vm1380_vm5, %v4764_v11  ;;  %v878_v16 = vpop.permute.xlu0 %877  ;;  %v836_v11 = vsel %vm668_vm1, %v831_v9, %v835_v12  ;;  %v1143_v35 = vrot.slane %v4352_v31, 1  ;;  %v1627_v8 = vor.u32 %v1626_v0, %v1622_v56  ;;  %v1737_v9 = vshll.u32 %v4364_v1, 16  ;;  %v4370_v31 = vld [vmem:[%s4555_s26 + $0x44] ss:$0 sps:$4 sm:$0x11]  }
  0x97   : > { %919 = vst.msk [vmem:[#allocation2 + $0x48] sm:$0xff] %vm909_vm3, %v880_v10  ;;  %918 = vst.msk [vmem:[#allocation2 + $0x40] sm:$0xff] %vm909_vm3, %v878_v16  ;;  %887 = vrot.lane.b32.xlu1 %v836_v11, %s4492_s29  ;;  %v4366_v10 = vld [vmem:[%s4555_s26 + $0x50] ss:$0 sps:$4 sm:$0x11]   ;;  %v1728_v13 = vsel %vm668_vm1, %v1723_v2, %v1727_v60  ;;  %v1636_v16 = vshll.u32 %v4365_v6, 16 }
  0x98   : > { %1209 = vst.msk [vmem:[#allocation2 + $0x48] sm:$0xff] %vm1199_vm4, %v1170_v37  ;;  %1208 = vst.msk [vmem:[#allocation2 + $0x40] sm:$0xff] %vm1199_vm4, %v4770_v22  ;;  %871 = vrot.lane.b32.xlu0 %v740_v25, %s4492_s29  ;;  %v1141_v22 = vsel %vm1102_vm0, %v1139_v20, %v1140_v21  ;;  %v1144_v40 = vsel %vm1102_vm0, %v1142_v32, %v1143_v35  ;;  %v1632_v17 = vsel %vm668_vm1, %v1627_v8, %v1631_v3  ;;  %v4367_v21 = vld [vmem:[%s4555_s26 + $0x9c] sm:$0xfe]   ;;  %v4384_v60 = vld [vmem:[%s4555_s26 + $0x48] sm:$0xff]  }
  0x99   : > { %v1351_v26 = vpop.permute.xlu1 %1350  ;;  %1389 = vst.msk [vmem:[#allocation2 + $0x40] sm:$0xff] %vm1380_vm5, %v4755_v63  ;;  %v1117_v63 = vsel %vm1102_vm0, %v1115_v28, %v1116_v29  ;;  %v1739_v11 = vrot.slane %v1737_v9, 1  ;;  %v1641_v18 = vshll.u32 %v4366_v10, 16  ;;  %v1638_v20 = vrot.slane %v1636_v16, 1  ;;  %v4378_v61 = vld [vmem:[%s4555_s26 + $0x54] sm:$0xff]   ;;  %v4386_v8 = vld [vmem:[%s5363_s2 + $0x8] sm:$0xff]  }
  0x9a   : > { %1390 = vst.msk [vmem:[#allocation2 + $0x48] sm:$0xff] %vm1380_vm5, %v1351_v26  ;;  %v1335_v27 = vpop.permute.xlu0 %1334  ;;  %v2042_v28 = vrot.slane %v4367_v21, 1  ;;  %v2043_v29 = vrot.slane %v4368_v23, 1  ;;  %v2018_v32 = vrot.slane %v4369_v30, 1  ;;  %v2019_v35 = vrot.slane %v4370_v31, 1  ;;  %v4389_v16 = vld [vmem:[%s4555_s26 + $0x54] sm:$0xff]  }
  0x9b   : > { %1382 = vst.msk [vmem:[#allocation2 + $0x8] sm:$0xff] %vm1380_vm5, %v1335_v27  ;;  %1175 = vrot.lane.b32.xlu1 %v1141_v22, %s4491_s28  ;;  %v1643_v25 = vrot.slane %v1641_v18, 1  ;;  %v1740_v27 = vsel %vm668_vm1, %v1735_v19, %v1739_v11  ;;  %v1639_v22 = vor.u32 %v1638_v20, %v1634_v15  ;;  %v2628_v2 = vshll.u32 %v4383_v59, 16  ;;  %v4385_v3 = vld [vmem:[%s4555_s26 + $0x50] ss:$0 sps:$4 sm:$0x11]  }
  0x9c   : > { %1159 = vrot.lane.b32.xlu0 %v1117_v63, %s4491_s28  ;;  %478 = vst.msk [vmem:[#allocation2 + $0x10] sm:$0xff] %vm475_vm2, %v4380_v54  ;;  %v2525_v4 = vshrl.u32 %v4384_v60, 16  ;;  %v2527_v5 = vshll.u32 %v4384_v60, 16  ;;  %v4388_v15 = vld [vmem:[%s4555_s26 + $0xbc] ss:$0 sps:$4 sm:$0x11]  }
  0x9d   : > { %v1782_v34 = vpop.permute.xlu1 %1781  ;;  %v1644_v63 = vsel %vm668_vm1, %v1639_v22, %v1643_v25  ;;  %v2630_v9 = vrot.slane %v2628_v2, 1  ;;  %v4391_v21 = vld [vmem:[%s4555_s26 + $0x84] sm:$0xff]   ;;  %v2640_v25 = vshll.u32 %v4388_v15, 16 }
  0x9e   : > { %1822 = vst.msk [vmem:[#allocation2 + $0x40] sm:$0xff] %vm1813_vm6, %v1782_v34  ;;  %v1766_v37 = vpop.permute.xlu0 %1765  ;;  %v2044_v34 = vsel %vm1102_vm0, %v2042_v28, %v2043_v29  ;;  %v2529_v10 = vrot.slane %v2527_v5, 1  ;;  %v2537_v28 = vshrl.u32 %v4389_v16, 16  ;;  %v2539_v29 = vshll.u32 %v4389_v16, 16  ;;  %v4392_v30 = vld [vmem:[%s4555_s26 + $0x24] sm:$0xff]   ;;  %v4406_v5 = vld [vmem:[%s4555_s26 + $0xb4] sm:$0xff]  }
  0x9f   : > { %1814 = vst.msk [vmem:[#allocation2] sm:$0xff] %vm1813_vm6, %v1766_v37  ;;  %1177 = vrot.lane.b32.xlu1 %v1144_v40, %s4491_s28  ;;  %v4372_v37 = vld [vmem:[%s4555_s26 + $0xb0] ss:$0 sps:$4 sm:$0x11]   ;;  %v2045_v40 = vrot.slane %v4371_v36, 1  ;;  %v2642_v31 = vrot.slane %v2640_v25, 1 }
  0xa0   : > { %1161 = vrot.lane.b32.xlu0 %v1120_v43, %s4491_s28  ;;  %v2046_v41 = vrot.slane %v4372_v37, 1  ;;  %v4374_v43 = vld [vmem:[%s4555_s26 + $0x50] ss:$0 sps:$4 sm:$0x11]   ;;  %v2530_v11 = vor.u32 %v2529_v10, %v2525_v4  ;;  %487 = vst.msk [vmem:[#allocation2 + $0x58] sm:$0xff] %vm475_vm2, %v4391_v21  ;;  %479 = vst.msk [vmem:[#allocation2 + $0x18] sm:$0xff] %vm475_vm2, %v4392_v30 }
  0xa1   : > { %v1784_v44 = vpop.permute.xlu1 %1783  ;;  %v2022_v48 = vrot.slane %v4374_v43, 1  ;;  %v4394_v43 = vld [vmem:[%s4555_s26 + $0xa8] sm:$0xfe]   ;;  %v4401_v4 = vld [vmem:[%s4555_s26 + $0x50] ss:$0 sps:$4 sm:$0x11]  }
  0xa2   : > { %1823 = vst.msk [vmem:[#allocation2 + $0x48] sm:$0xff] %vm1813_vm6, %v1784_v44  ;;  %v1768_v45 = vpop.permute.xlu0 %1767  ;;  %v749_v10 = vshll.u32 %v4401_v4, 16  ;;  %v4405_v25 = vld [vmem:[%s4555_s26 + $0x5c] ss:$0 sps:$4 sm:$0x11]  }
  0xa3   : > { %1815 = vst.msk [vmem:[#allocation2 + $0x8] sm:$0xff] %vm1813_vm6, %v1768_v45  ;;  %1356 = vrot.lane.b32.xlu1 %v4355_v39, %s4490_s27  ;;  %v2020_v39 = vsel %vm1102_vm0, %v2018_v32, %v2019_v35  ;;  %v2047_v45 = vsel %vm1102_vm0, %v2045_v40, %v2046_v41  ;;  %v2541_v35 = vrot.slane %v2539_v29, 1  ;;  %v4398_v40 = vld [vmem:[%s4555_s26 + $0xa8] sm:$0xff]   ;;  %v2925_v29 = vrot.slane %v4405_v25, 1  ;;  %v4421_v25 = vld [vmem:[%s4555_s26 + $0x60] sm:$0xff]  }
  0xa4   : > { %1340 = vrot.lane.b32.xlu0 %v4356_v42, %s4490_s27  ;;  %v4373_v42 = vld [vmem:[%s4555_s26 + $0x48] sm:$0xfe]  }
  0xa5   : > { %v2071_v55 = vpop.permute.xlu1 %2070 }
  0xa6   : > { %2111 = vst.msk [vmem:[#allocation2 + $0x40] sm:$0xff] %vm2102_vm7, %v2071_v55  ;;  %v2055_v58 = vpop.permute.xlu0 %2054  ;;  %v4381_v55 = vld [vmem:[%s5363_s2] sm:$0xff]  }
  0xa7   : > { %2103 = vst.msk [vmem:[#allocation2] sm:$0xff] %vm2102_vm7, %v2055_v58  ;;  %1358 = vrot.lane.b32.xlu1 %v4357_v46, %s4490_s27  ;;  %v2021_v46 = vrot.slane %v4373_v42, 1  ;;  %v4382_v58 = vld [vmem:[%s4555_s26 + $0xa8] sm:$0xff]   ;;  %4144 = vmatprep.subr.bf16.mxu0 %v4381_v55  ;;  %v2542_v42 = vor.u32 %v2541_v35, %v2537_v28  ;;  %v4409_v35 = vld [vmem:[%s4555_s26 + $0x5c] ss:$0 sps:$4 sm:$0x11]  }
  0xa8   : > { %1342 = vrot.lane.b32.xlu0 %v4358_v50, %s4490_s27  ;;  %v4379_v50 = vld [vmem:[%s4555_s26 + $0x78] sm:$0xff]   ;;  %4182 = vmatprep.subr.bf16.mxu1 %v4381_v55  ;;  %v2621_v62 = vshrl.u32 %v4382_v58, 16  ;;  %v2623_v0 = vshll.u32 %v4382_v58, 16  ;;  %v840_v58 = vshll.u32 %v4398_v40, 16 }
  0xa9   : > { %v2073_v7 = vpop.permute.xlu1 %2072  ;;  %v2023_v51 = vsel %vm1102_vm0, %v2021_v46, %v2022_v48  ;;  %486 = vst.msk [vmem:[#allocation2 + $0x50] sm:$0xff] %vm475_vm2, %v4379_v50  ;;  %4145 = vmatpush3.bf16.msra.mxu0 %v4381_v55  ;;  %4185 = vmatpush3.bf16.msra.mxu1 %v4381_v55  ;;  %v2945_v48 = vrot.slane %v4394_v43, 1 }
  0xaa   : > { %2112 = vst.msk [vmem:[#allocation2 + $0x48] sm:$0xff] %vm2102_vm7, %v2073_v7  ;;  %v2057_v12 = vpop.permute.xlu0 %2056  ;;  %v2625_v7 = vrot.slane %v2623_v0, 1  ;;  %4146 = vmatprep.subr.bf16.mxu0 %v4386_v8  ;;  %4183 = vmatprep.subr.bf16.mxu1 %v4386_v8 }
  0xab   : > { %2104 = vst.msk [vmem:[#allocation2 + $0x8] sm:$0xff] %vm2102_vm7, %v2057_v12  ;;  %1789 = vrot.lane.b32.xlu1 %v1728_v13, %s4493_s30  ;;  %v2532_v12 = vshll.u32 %v4385_v3, 16  ;;  %v4387_v13 = vld [vmem:[%s4555_s26 + $0xb4] sm:$0xff]   ;;  %v4400_v3 = vld [vmem:[%s4555_s26 + $0x48] sm:$0xff]  }
  0xac   : > { %1773 = vrot.lane.b32.xlu0 %v1632_v17, %s4493_s30  ;;  %v2626_v14 = vor.u32 %v2625_v7, %v2621_v62  ;;  %v2633_v19 = vshrl.u32 %v4387_v13, 16  ;;  %v2635_v20 = vshll.u32 %v4387_v13, 16  ;;  %v4402_v13 = vld [vmem:[%s4555_s26 + $0xb4] sm:$0xfe]  }
  0xad   : > { %v2252_v24 = vpop.permute.xlu1 %2251  ;;  %v2534_v18 = vrot.slane %v2532_v12, 1  ;;  %4147 = vmatpush3.bf16.msra.mxu0 %v4386_v8  ;;  %4186 = vmatpush3.bf16.msra.mxu1 %v4386_v8  ;;  %v742_v8 = vshrl.u32 %v4400_v3, 16 }
  0xae   : > { %2292 = vst.msk [vmem:[#allocation2 + $0x40] sm:$0xff] %vm2283_vm8, %v2252_v24  ;;  %v2236_v26 = vpop.permute.xlu0 %2235  ;;  %v2631_v24 = vsel %vm668_vm1, %v2626_v14, %v2630_v9  ;;  %v2637_v22 = vrot.slane %v2635_v20, 1  ;;  %v744_v9 = vshll.u32 %v4400_v3, 16  ;;  %v850_v14 = vshrl.u32 %v4406_v5, 16  ;;  %v4408_v20 = vld [vmem:[%s4555_s26 + $0x54] sm:$0xff]  }
  0xaf   : > { %2284 = vst.msk [vmem:[#allocation2] sm:$0xff] %vm2283_vm8, %v2236_v26  ;;  %1791 = vrot.lane.b32.xlu1 %v1740_v27, %s4493_s30  ;;  %v4390_v26 = vld [vmem:[%s4555_s26 + $0x5c] ss:$0 sps:$4 sm:$0x11]   ;;  %v2535_v27 = vsel %vm668_vm1, %v2530_v11, %v2534_v18  ;;  %v751_v18 = vrot.slane %v749_v10, 1 }
  0xb0   : > { %1775 = vrot.lane.b32.xlu0 %v1644_v63, %s4493_s30  ;;  %v2544_v63 = vshll.u32 %v4390_v26, 16  ;;  %v746_v16 = vrot.slane %v744_v9, 1  ;;  %v4403_v11 = vld [vmem:[%s4555_s26 + $0xbc] ss:$0 sps:$4 sm:$0x11]   ;;  %v4422_v9 = vld [vmem:[%s4555_s26 + $0xb4] sm:$0xff]  }
  0xb1   : > { %v2254_v33 = vpop.permute.xlu1 %2253  ;;  %v4417_v3 = vld [vmem:[%s4555_s26 + $0x5c] ss:$0 sps:$4 sm:$0x11]  }
  0xb2   : > { %2293 = vst.msk [vmem:[#allocation2 + $0x48] sm:$0xff] %vm2283_vm8, %v2254_v33  ;;  %v2238_v38 = vpop.permute.xlu0 %2237  ;;  %v747_v21 = vor.u32 %v746_v16, %v742_v8  ;;  %v4418_v8 = vld [vmem:[%s4555_s26 + $0xb4] sm:$0xff]   ;;  %v1742_v16 = vshrl.u32 %v4422_v9, 16 }
  0xb3   : > { %2285 = vst.msk [vmem:[#allocation2 + $0x8] sm:$0xff] %vm2283_vm8, %v2238_v38  ;;  %2078 = vrot.lane.b32.xlu1 %v2044_v34, %s4494_s6  ;;  %v2638_v34 = vor.u32 %v2637_v22, %v2633_v19  ;;  %v2546_v38 = vrot.slane %v2544_v63, 1  ;;  %v2948_v19 = vrot.slane %v4402_v13, 1  ;;  %v852_v63 = vshll.u32 %v4406_v5, 16  ;;  %v4419_v13 = vld [vmem:[%s4555_s26 + $0x54] sm:$0xff]  }
  0xb4   : > { %2062 = vrot.lane.b32.xlu0 %v2020_v39, %s4494_s6  ;;  %v4393_v39 = vld [vmem:[%s5363_s2 + $0x10] ss:$0 sps:$4 sm:$0x33]  }
  0xb5   : > { %v2685_v44 = vpop.permute.xlu1 %2684  ;;  %v2643_v41 = vsel %vm668_vm1, %v2638_v34, %v2642_v31  ;;  %4188 = vmatprep.subr.msk.bf16.mxu0 %vm3114_vm12, %v4393_v39  ;;  %v2547_v46 = vsel %vm668_vm1, %v2542_v42, %v2546_v38  ;;  %4189 = vmatprep.subr.msk.bf16.mxu1 %vm3114_vm12, %v4393_v39  ;;  %v4407_v31 = vld [vmem:[%s4555_s26 + $0xbc] ss:$0 sps:$4 sm:$0x11]   ;;  %v4410_v42 = vld [vmem:[%s4555_s26 + $0xa8] sm:$0xfe]  }
  0xb6   : > { %2725 = vst.msk [vmem:[#allocation2 + $0x40] sm:$0xff] %vm2716_vm9, %v2685_v44  ;;  %v2669_v47 = vpop.permute.xlu0 %2668  ;;  %v3116_v44 = vsel %vm3114_vm12, %v4393_v39, 0  ;;  %v857_v34 = vshll.u32 %v4407_v31, 16 }
  0xb7   : > { %2717 = vst.msk [vmem:[#allocation2] sm:$0xff] %vm2716_vm9, %v2669_v47  ;;  %2080 = vrot.lane.b32.xlu1 %v2047_v45, %s4494_s6  ;;  %v4395_v45 = vld [vmem:[%s4555_s26 + $0xb0] ss:$0 sps:$4 sm:$0x11]   ;;  %4149 = vmatpush3.bf16.msra.mxu0 %v3116_v44 }
  0xb8   : > { %2064 = vrot.lane.b32.xlu0 %v2023_v51, %s4494_s6  ;;  %4187 = vmatpush3.bf16.msra.mxu1 %v3116_v44  ;;  %v2946_v51 = vrot.slane %v4395_v45, 1  ;;  %v859_v39 = vrot.slane %v857_v34, 1  ;;  %v4411_v45 = vld [vmem:[%s4555_s26 + $0xb0] ss:$0 sps:$4 sm:$0x11]  }
  0xb9   : > { %v2687_v53 = vpop.permute.xlu1 %2686 }
  0xba   : > { %2726 = vst.msk [vmem:[#allocation2 + $0x48] sm:$0xff] %vm2716_vm9, %v2687_v53  ;;  %v2671_v56 = vpop.permute.xlu0 %2670  ;;  %v4397_v53 = vld [vmem:[%s4555_s26 + $0x50] ss:$0 sps:$4 sm:$0x11]   ;;  %v2947_v54 = vsel %vm1102_vm0, %v2945_v48, %v2946_v51  ;;  %v4412_v51 = vld [vmem:[%s4555_s26 + $0x48] sm:$0xfe]  }
  0xbb   : > { %2718 = vst.msk [vmem:[#allocation2 + $0x8] sm:$0xff] %vm2716_vm9, %v2671_v56  ;;  %2259 = vrot.lane.b32.xlu1 %v4375_v49, %s4495_s7  ;;  %v838_v49 = vshrl.u32 %v4398_v40, 16  ;;  %v2922_v56 = vrot.slane %v4397_v53, 1  ;;  %v761_v40 = vshll.u32 %v4409_v35, 16 }
  0xbc   : > { %2243 = vrot.lane.b32.xlu0 %v4376_v52, %s4495_s7  ;;  %v4396_v52 = vld [vmem:[%s4555_s26 + $0x48] sm:$0xfe]  }
  0xbd   : > { %v2974_v1 = vpop.permute.xlu1 %2973  ;;  %v2921_v55 = vrot.slane %v4396_v52, 1  ;;  %v4413_v52 = vld [vmem:[%s4555_s26 + $0x50] ss:$0 sps:$4 sm:$0x11]  }
  0xbe   : > { %3014 = vst.msk [vmem:[#allocation2 + $0x40] sm:$0xff] %vm3005_vm10, %v2974_v1  ;;  %v2958_v6 = vpop.permute.xlu0 %2957  ;;  %v842_v1 = vrot.slane %v840_v58, 1  ;;  %v1122_v58 = vrot.slane %v4413_v52, 1  ;;  %v4431_v52 = vld [vmem:[%s4555_s26 + $0xbc] ss:$0 sps:$4 sm:$0x11]  }
  0xbf   : > { %3006 = vst.msk [vmem:[#allocation2] sm:$0xff] %vm3005_vm10, %v2958_v6  ;;  %2261 = vrot.lane.b32.xlu1 %v4377_v57, %s4495_s7  ;;  %v4399_v57 = vld [vmem:[%s4555_s26 + $0xb0] ss:$0 sps:$4 sm:$0x11]  }
  0xc0   : > { %2245 = vrot.lane.b32.xlu0 %v4378_v61, %s4495_s7  ;;  %v2923_v61 = vsel %vm1102_vm0, %v2921_v55, %v2922_v56  ;;  %v845_v2 = vshll.u32 %v4399_v57, 16  ;;  %v843_v6 = vor.u32 %v842_v1, %v838_v49  ;;  %v1121_v57 = vrot.slane %v4412_v51, 1 }
  0xc1   : > { %v882_v17 = vpop.permute.xlu1 %881 }
  0xc2   : > { %920 = vst.msk [vmem:[#allocation2 + $0x50] sm:$0xff] %vm909_vm3, %v882_v17  ;;  %v866_v23 = vpop.permute.xlu0 %865  ;;  %v847_v7 = vrot.slane %v845_v2, 1 }
  0xc3   : > { %912 = vst.msk [vmem:[#allocation2 + $0x10] sm:$0xff] %vm909_vm3, %v866_v23  ;;  %2692 = vrot.lane.b32.xlu1 %v2631_v24, %s4496_s8  ;;  %v2949_v23 = vrot.slane %v4403_v11, 1  ;;  %v4404_v24 = vld [vmem:[%s4555_s26 + $0x54] sm:$0xfe]  }
  0xc4   : > { %2676 = vrot.lane.b32.xlu0 %v2535_v27, %s4496_s8  ;;  %v848_v15 = vsel %vm668_vm1, %v843_v6, %v847_v7  ;;  %v752_v27 = vsel %vm668_vm1, %v747_v21, %v751_v18  ;;  %v2924_v28 = vrot.slane %v4404_v24, 1  ;;  %v1125_v7 = vrot.slane %v4417_v3, 1  ;;  %v4424_v11 = vld [vmem:[%s4555_s26 + $0x54] sm:$0xff]   ;;  %v4420_v18 = vld [vmem:[%s4555_s26 + $0xc0] sm:$0xff]  }
  0xc5   : > { %v2976_v32 = vpop.permute.xlu1 %2975  ;;  %v3030_v33 = vld [vmem:[#allocation2 + $0x40] sm:$0xff]  ;;  %v2950_v22 = vsel %vm1102_vm0, %v2948_v19, %v2949_v23  ;;  %v4425_v23 = vld [vmem:[%s4555_s26 + $0x5c] ss:$0 sps:$4 sm:$0x11]   ;;  %v1646_v24 = vshrl.u32 %v4424_v11, 16 }
  0xc6   : > { %3015 = vst.msk [vmem:[#allocation2 + $0x48] sm:$0xff] %vm3005_vm10, %v2976_v32  ;;  %v2960_v36 = vpop.permute.xlu0 %2959  ;;  %v3022_v37 = vld [vmem:[#allocation2] sm:$0xff]  ;;  %4166 = vmatprep.mubr.msk.bf16.mxu1 %vm3065_vm11, %v3030_v33  ;;  %v754_v32 = vshrl.u32 %v4408_v20, 16  ;;  %v2926_v33 = vsel %vm1102_vm0, %v2924_v28, %v2925_v29 }
  0xc7   : > { %3007 = vst.msk [vmem:[#allocation2 + $0x8] sm:$0xff] %vm3005_vm10, %v2960_v36  ;;  %4150 = vmatprep.mubr.msk.bf16.mxu0 %vm3065_vm11, %v3022_v37  ;;  %2694 = vrot.lane.b32.xlu1 %v2643_v41, %s4496_s8  ;;  %v854_v36 = vrot.slane %v852_v63, 1  ;;  %v756_v37 = vshll.u32 %v4408_v20, 16  ;;  %v4427_v63 = vld [vmem:[%s4555_s26 + $0xc8] ss:$0 sps:$4 sm:$0x11]  }
  0xc8   : > { %2678 = vrot.lane.b32.xlu0 %v2547_v46, %s4496_s8  ;;  %v763_v46 = vrot.slane %v761_v40, 1  ;;  %v1761_v40 = vshll.u32 %v4427_v63, 16 }
  0xc9   : > { %v884_v47 = vpop.permute.xlu1 %883  ;;  %v855_v43 = vor.u32 %v854_v36, %v850_v14  ;;  %v758_v44 = vrot.slane %v756_v37, 1  ;;  %v4428_v36 = vld [vmem:[%s4555_s26 + $0x60] sm:$0xff]  }
  0xca   : > { %921 = vst.msk [vmem:[#allocation2 + $0x58] sm:$0xff] %vm909_vm3, %v884_v47  ;;  %v868_v50 = vpop.permute.xlu0 %867  ;;  %v1145_v47 = vrot.slane %v4410_v42, 1 }
  0xcb   : > { %913 = vst.msk [vmem:[#allocation2 + $0x18] sm:$0xff] %vm909_vm3, %v868_v50  ;;  %2981 = vrot.lane.b32.xlu1 %v2947_v54, %s4497_s9  ;;  %v860_v48 = vsel %vm668_vm1, %v855_v43, %v859_v39  ;;  %v759_v49 = vor.u32 %v758_v44, %v754_v32  ;;  %v1146_v50 = vrot.slane %v4411_v45, 1  ;;  %v1658_v43 = vshrl.u32 %v4428_v36, 16 }
  0xcc   : > { %2965 = vrot.lane.b32.xlu0 %v2923_v61, %s4497_s9  ;;  %v1123_v61 = vsel %vm1102_vm0, %v1121_v57, %v1122_v58  ;;  %v1660_v44 = vshll.u32 %v4428_v36, 16  ;;  %v2049_v58 = vrot.slane %v4431_v52, 1  ;;  %v4448_v36 = vld [vmem:[%s4555_s26 + $0xcc] sm:$0xff]  }
  0xcd   : > { %v1172_v59 = vpop.permute.xlu1 %1171  ;;  %v3031_v60 = vld [vmem:[#allocation2 + $0x48] sm:$0xff]  ;;  %v764_v55 = vsel %vm668_vm1, %v759_v49, %v763_v46  ;;  %v1147_v56 = vsel %vm1102_vm0, %v1145_v47, %v1146_v50  ;;  %v1763_v46 = vrot.slane %v1761_v40, 1 }
  0xce   : > { %1210 = vst.msk [vmem:[#allocation2 + $0x50] sm:$0xff] %vm1199_vm4, %v1172_v59  ;;  %v1156_v62 = vpop.permute.xlu0 %1155  ;;  %v3023_v0 = vld [vmem:[#allocation2 + $0x8] sm:$0xff]  ;;  %4167 = vmatmul.mubr.msk.bf16.vlgmr.msra.gmra.mrb[0].mxu1 %vm3065_vm11, %v3031_v60  ;;  %v4414_v59 = vld [vmem:[%s4555_s26 + $0xb4] sm:$0xfe]   ;;  %v1662_v50 = vrot.slane %v1660_v44, 1  ;;  %v2659_v44 = vshll.u32 %v4448_v36, 16 }
  0xcf   : > { %1202 = vst.msk [vmem:[#allocation2 + $0x10] sm:$0xff] %vm1199_vm4, %v1156_v62  ;;  %4151 = vmatmul.mubr.msk.bf16.vlgmr.msra.gmra.mrb[0].mxu0 %vm3065_vm11, %v3023_v0  ;;  %889 = vrot.lane.b32.xlu1 %v848_v15, %s4492_s29  ;;  %v4415_v60 = vld [vmem:[%s4555_s26 + $0xbc] ss:$0 sps:$4 sm:$0x11]   ;;  %v1148_v62 = vrot.slane %v4414_v59, 1  ;;  %v4450_v40 = vld [vmem:[%s4555_s26 + $0x6c] sm:$0xff]  }
  0xd0   : > { %873 = vrot.lane.b32.xlu0 %v752_v27, %s4492_s29  ;;  %v4416_v0 = vld [vmem:[%s4555_s26 + $0x54] sm:$0xfe]   ;;  %v1149_v2 = vrot.slane %v4415_v60, 1  ;;  %v4423_v15 = vld [vmem:[%s4555_s26 + $0xbc] ss:$0 sps:$4 sm:$0x11]   ;;  %v1663_v57 = vor.u32 %v1662_v50, %v1658_v43 }
  0xd1   : > { %v1174_v12 = vpop.permute.xlu1 %1173  ;;  %v1124_v5 = vrot.slane %v4416_v0, 1  ;;  %v1749_v21 = vshll.u32 %v4423_v15, 16  ;;  %v1648_v27 = vshll.u32 %v4424_v11, 16  ;;  %v4432_v59 = vld [vmem:[%s4555_s26 + $0x54] sm:$0xfe]   ;;  %v4438_v11 = vld [vmem:[%s4555_s26 + $0xc0] sm:$0xff]  }
  0xd2   : > { %1211 = vst.msk [vmem:[#allocation2 + $0x58] sm:$0xff] %vm1199_vm4, %v1174_v12  ;;  %v1158_v17 = vpop.permute.xlu0 %1157  ;;  %v1150_v6 = vsel %vm1102_vm0, %v1148_v62, %v1149_v2  ;;  %v4433_v60 = vld [vmem:[%s4555_s26 + $0x5c] ss:$0 sps:$4 sm:$0x11]   ;;  %v2024_v62 = vrot.slane %v4432_v59, 1  ;;  %v2657_v43 = vshrl.u32 %v4448_v36, 16 }
  0xd3   : > { %1203 = vst.msk [vmem:[#allocation2 + $0x18] sm:$0xff] %vm1199_vm4, %v1158_v17  ;;  %2983 = vrot.lane.b32.xlu1 %v2950_v22, %s4497_s9  ;;  %v1126_v12 = vsel %vm1102_vm0, %v1124_v5, %v1125_v7  ;;  %v1744_v17 = vshll.u32 %v4422_v9, 16  ;;  %v4426_v22 = vld [vmem:[%s4555_s26 + $0xc0] sm:$0xff]   ;;  %v1751_v29 = vrot.slane %v1749_v21, 1  ;;  %v1650_v31 = vrot.slane %v1648_v27, 1  ;;  %v4440_v27 = vld [vmem:[%s4555_s26 + $0xcc] sm:$0xff]  }
  0xd4   : > { %2967 = vrot.lane.b32.xlu0 %v2926_v33, %s4497_s9  ;;  %v1754_v32 = vshrl.u32 %v4426_v22, 16  ;;  %v1756_v33 = vshll.u32 %v4426_v22, 16  ;;  %v2025_v0 = vrot.slane %v4433_v60, 1  ;;  %v4434_v2 = vld [vmem:[%s4555_s26 + $0xc0] sm:$0xfe]   ;;  %v2661_v52 = vrot.slane %v2659_v44, 1 }
  0xd5   : > { %v1353_v26 = vpop.permute.xlu1 %1352  ;;  %v1746_v20 = vrot.slane %v1744_v17, 1  ;;  %v1651_v37 = vor.u32 %v1650_v31, %v1646_v24  ;;  %v4436_v7 = vld [vmem:[%s4555_s26 + $0x60] sm:$0xfe]   ;;  %v4437_v9 = vld [vmem:[%s4555_s26 + $0x68] ss:$0 sps:$4 sm:$0x11]  }
  0xd6   : > { %1391 = vst.msk [vmem:[#allocation2 + $0x50] sm:$0xff] %vm1380_vm5, %v1353_v26  ;;  %v1337_v30 = vpop.permute.xlu0 %1336  ;;  %v1758_v39 = vrot.slane %v1756_v33, 1  ;;  %v4439_v21 = vld [vmem:[%s4555_s26 + $0x60] sm:$0xff]   ;;  %v4447_v31 = vld [vmem:[%s4555_s26 + $0x68] ss:$0 sps:$4 sm:$0x11]  }
  0xd7   : > { %1383 = vst.msk [vmem:[#allocation2 + $0x10] sm:$0xff] %vm1380_vm5, %v1337_v30  ;;  %891 = vrot.lane.b32.xlu1 %v860_v48, %s4492_s29  ;;  %v1747_v28 = vor.u32 %v1746_v20, %v1742_v16  ;;  %v1653_v30 = vshll.u32 %v4425_v23, 16  ;;  %v4430_v48 = vld [vmem:[%s4555_s26 + $0xb4] sm:$0xfe]   ;;  %v4444_v24 = vld [vmem:[%s4555_s26 + $0xc0] sm:$0xff]   ;;  %v4441_v33 = vld [vmem:[%s4555_s26 + $0x6c] sm:$0xff]  }
  0xd8   : > { %875 = vrot.lane.b32.xlu0 %v764_v55, %s4492_s29  ;;  %v1759_v45 = vor.u32 %v1758_v39, %v1754_v32  ;;  %v2048_v55 = vrot.slane %v4430_v48, 1  ;;  %v4442_v16 = vld [vmem:[%s4555_s26 + $0x90] sm:$0xff]   ;;  %v2645_v22 = vshrl.u32 %v4444_v24, 16  ;;  %v2556_v39 = vshll.u32 %v4447_v31, 16  ;;  %v4453_v60 = vld [vmem:[%s4555_s26 + $0x3c] sm:$0xff]  }
  0xd9   : > { %v1355_v38 = vpop.permute.xlu1 %1354  ;;  %v1655_v34 = vrot.slane %v1653_v30, 1  ;;  %v1752_v42 = vsel %vm668_vm1, %v1747_v28, %v1751_v29  ;;  %488 = vst.msk [vmem:[#allocation2 + $0x60] sm:$0xff] %vm475_vm2, %v4442_v16  ;;  %v4443_v20 = vld [vmem:[%s4555_s26 + $0x30] sm:$0xff]   ;;  %v2647_v28 = vshll.u32 %v4444_v24, 16  ;;  %481 = vst.msk [vmem:[#allocation2 + $0x28] sm:$0xff] %vm475_vm2, %v4453_v60  ;;  %v4463_v24 = vld [vmem:[%s4555_s26 + $0x48] sm:$0xff]  }
  0xda   : > { %1392 = vst.msk [vmem:[#allocation2 + $0x58] sm:$0xff] %vm1380_vm5, %v1355_v38  ;;  %v1339_v41 = vpop.permute.xlu0 %1338  ;;  %v2050_v5 = vsel %vm1102_vm0, %v2048_v55, %v2049_v58  ;;  %v2662_v58 = vor.u32 %v2661_v52, %v2657_v43 }
  0xdb   : > { %1384 = vst.msk [vmem:[#allocation2 + $0x18] sm:$0xff] %vm1380_vm5, %v1339_v41  ;;  %1179 = vrot.lane.b32.xlu1 %v1147_v56, %s4491_s28  ;;  %v4429_v41 = vld [vmem:[%s4555_s26 + $0x68] ss:$0 sps:$4 sm:$0x11]   ;;  %v1656_v49 = vsel %vm668_vm1, %v1651_v37, %v1655_v34  ;;  %v1764_v56 = vsel %vm668_vm1, %v1759_v45, %v1763_v46  ;;  %v4452_v45 = vld [vmem:[%s4555_s26 + $0x9c] sm:$0xff]  }
  0xdc   : > { %1163 = vrot.lane.b32.xlu0 %v1123_v61, %s4491_s28  ;;  %v1665_v47 = vshll.u32 %v4429_v41, 16  ;;  %480 = vst.msk [vmem:[#allocation2 + $0x20] sm:$0xff] %vm475_vm2, %v4443_v20  ;;  %489 = vst.msk [vmem:[#allocation2 + $0x68] sm:$0xff] %vm475_vm2, %v4452_v45 }
  0xdd   : > { %v1786_v53 = vpop.permute.xlu1 %1785  ;;  %482 = vst.msk [vmem:[#allocation2 + $0x30] sm:$0xff] %vm475_vm2, %v4463_v24 }
  0xde   : > { %1824 = vst.msk [vmem:[#allocation2 + $0x50] sm:$0xff] %vm1813_vm6, %v1786_v53  ;;  %v1770_v54 = vpop.permute.xlu0 %1769  ;;  %v1667_v53 = vrot.slane %v1665_v47, 1  ;;  %v2558_v47 = vrot.slane %v2556_v39, 1 }
  0xdf   : > { %1816 = vst.msk [vmem:[#allocation2 + $0x10] sm:$0xff] %vm1813_vm6, %v1770_v54  ;;  %1181 = vrot.lane.b32.xlu1 %v1150_v6, %s4491_s28  ;;  %v2051_v6 = vrot.slane %v4434_v2, 1  ;;  %v4454_v2 = vld [vmem:[%s4555_s26 + $0xc0] sm:$0xfe]  }
  0xe0   : > { %1165 = vrot.lane.b32.xlu0 %v1126_v12, %s4491_s28  ;;  %v1668_v61 = vsel %vm668_vm1, %v1663_v57, %v1667_v53  ;;  %v2027_v12 = vrot.slane %v4436_v7, 1  ;;  %v2563_v57 = vshll.u32 %v4450_v40, 16  ;;  %s5243_s28 = scalar_lea.vmem %s5366_s5, %s4123_s17 }
  0xe1   : > { %v1788_v1 = vpop.permute.xlu1 %1787 }
  0xe2   : > { %1825 = vst.msk [vmem:[#allocation2 + $0x58] sm:$0xff] %vm1813_vm6, %v1788_v1  ;;  %v1772_v4 = vpop.permute.xlu0 %1771 }
  0xe3   : > { %1817 = vst.msk [vmem:[#allocation2 + $0x18] sm:$0xff] %vm1813_vm6, %v1772_v4  ;;  %1360 = vrot.lane.b32.xlu1 %v4418_v8, %s4490_s27  ;;  %v4435_v4 = vld [vmem:[%s4555_s26 + $0xc8] ss:$0 sps:$4 sm:$0x11]  }
  0xe4   : > { %1344 = vrot.lane.b32.xlu0 %v4419_v13, %s4490_s27  ;;  %v2052_v8 = vrot.slane %v4435_v4, 1 }
  0xe5   : > { %v2075_v10 = vpop.permute.xlu1 %2074 }
  0xe6   : > { %2113 = vst.msk [vmem:[#allocation2 + $0x50] sm:$0xff] %vm2102_vm7, %v2075_v10  ;;  %v2059_v14 = vpop.permute.xlu0 %2058  ;;  %v2026_v10 = vsel %vm1102_vm0, %v2024_v62, %v2025_v0  ;;  %v2053_v17 = vsel %vm1102_vm0, %v2051_v6, %v2052_v8  ;;  %v2565_v62 = vrot.slane %v2563_v57, 1  ;;  %v4455_v6 = vld [vmem:[%s4555_s26 + $0xc8] ss:$0 sps:$4 sm:$0x11]   ;;  %v2951_v8 = vrot.slane %v4454_v2, 1 }
  0xe7   : > { %2105 = vst.msk [vmem:[#allocation2 + $0x10] sm:$0xff] %vm2102_vm7, %v2059_v14  ;;  %1362 = vrot.lane.b32.xlu1 %v4420_v18, %s4490_s27  ;;  %v2028_v14 = vrot.slane %v4437_v9, 1  ;;  %v4462_v9 = vld [vmem:[%s4555_s26 + $0xa8] sm:$0xff]  }
  0xe8   : > { %1346 = vrot.lane.b32.xlu0 %v4421_v25, %s4490_s27  ;;  %v4445_v25 = vld [vmem:[%s4555_s26 + $0xc8] ss:$0 sps:$4 sm:$0x11]   ;;  %490 = vst.msk [vmem:[#allocation2 + $0x70] sm:$0xff] %vm475_vm2, %v4462_v9 }
  0xe9   : > { %v2077_v19 = vpop.permute.xlu1 %2076  ;;  %v2029_v18 = vsel %vm1102_vm0, %v2027_v12, %v2028_v14  ;;  %v2652_v30 = vshll.u32 %v4445_v25, 16  ;;  %v2952_v12 = vrot.slane %v4455_v6, 1  ;;  %v4457_v14 = vld [vmem:[%s4555_s26 + $0x68] ss:$0 sps:$4 sm:$0x11]  }
  0xea   : > { %2114 = vst.msk [vmem:[#allocation2 + $0x58] sm:$0xff] %vm2102_vm7, %v2077_v19  ;;  %v2061_v26 = vpop.permute.xlu0 %2060 }
  0xeb   : > { %2106 = vst.msk [vmem:[#allocation2 + $0x18] sm:$0xff] %vm2102_vm7, %v2061_v26  ;;  %1793 = vrot.lane.b32.xlu1 %v1752_v42, %s4493_s30  ;;  %v4446_v26 = vld [vmem:[%s4555_s26 + $0x60] sm:$0xff]   ;;  %v2654_v37 = vrot.slane %v2652_v30, 1  ;;  %v4449_v42 = vld [vmem:[%s4555_s26 + $0xd4] ss:$0 sps:$4 sm:$0x11]  }
  0xec   : > { %1777 = vrot.lane.b32.xlu0 %v1656_v49, %s4493_s30  ;;  %v2549_v63 = vshrl.u32 %v4446_v26, 16  ;;  %v2551_v32 = vshll.u32 %v4446_v26, 16  ;;  %v2664_v53 = vshll.u32 %v4449_v42, 16  ;;  %v4464_v30 = vld [vmem:[%s4555_s26 + $0xb4] sm:$0xff]  }
  0xed   : > { %v2256_v35 = vpop.permute.xlu1 %2255  ;;  %491 = vst.msk [vmem:[#allocation2 + $0x78] sm:$0xff] %vm475_vm2, %v4464_v30 }
  0xee   : > { %2294 = vst.msk [vmem:[#allocation2 + $0x50] sm:$0xff] %vm2283_vm8, %v2256_v35  ;;  %v2240_v38 = vpop.permute.xlu0 %2239  ;;  %v2649_v35 = vrot.slane %v2647_v28, 1  ;;  %v2666_v59 = vrot.slane %v2664_v53, 1 }
  0xef   : > { %2286 = vst.msk [vmem:[#allocation2 + $0x10] sm:$0xff] %vm2283_vm8, %v2240_v38  ;;  %1795 = vrot.lane.b32.xlu1 %v1764_v56, %s4493_s30  ;;  %v2553_v38 = vrot.slane %v2551_v32, 1  ;;  %v4451_v56 = vld [vmem:[%s4555_s26 + $0x74] ss:$0 sps:$4 sm:$0x11]  }
  0xf0   : > { %1779 = vrot.lane.b32.xlu0 %v1668_v61, %s4493_s30  ;;  %v2650_v41 = vor.u32 %v2649_v35, %v2645_v22  ;;  %v2568_v0 = vshll.u32 %v4451_v56, 16  ;;  %v4460_v22 = vld [vmem:[%s4555_s26 + $0x6c] sm:$0xfe]  }
  0xf1   : > { %v2258_v51 = vpop.permute.xlu1 %2257  ;;  %v2554_v46 = vor.u32 %v2553_v38, %v2549_v63  ;;  %v2930_v63 = vrot.slane %v4460_v22, 1 }
  0xf2   : > { %2295 = vst.msk [vmem:[#allocation2 + $0x58] sm:$0xff] %vm2283_vm8, %v2258_v51  ;;  %v2242_v54 = vpop.permute.xlu0 %2241  ;;  %v2655_v55 = vsel %vm668_vm1, %v2650_v41, %v2654_v37 }
  0xf3   : > { %2287 = vst.msk [vmem:[#allocation2 + $0x18] sm:$0xff] %vm2283_vm8, %v2242_v54  ;;  %2082 = vrot.lane.b32.xlu1 %v2050_v5, %s4494_s6  ;;  %v2561_v54 = vshrl.u32 %v4450_v40, 16  ;;  %v2559_v61 = vsel %vm668_vm1, %v2554_v46, %v2558_v47  ;;  %v2570_v5 = vrot.slane %v2568_v0, 1 }
  0xf4   : > { %2066 = vrot.lane.b32.xlu0 %v2026_v10, %s4494_s6 }
  0xf5   : > { %v2689_v1 = vpop.permute.xlu1 %2688  ;;  %v2566_v4 = vor.u32 %v2565_v62, %v2561_v54 }
  0xf6   : > { %2727 = vst.msk [vmem:[#allocation2 + $0x50] sm:$0xff] %vm2716_vm9, %v2689_v1  ;;  %v2673_v3 = vpop.permute.xlu0 %2672 }
  0xf7   : > { %2719 = vst.msk [vmem:[#allocation2 + $0x10] sm:$0xff] %vm2716_vm9, %v2673_v3  ;;  %2084 = vrot.lane.b32.xlu1 %v2053_v17, %s4494_s6  ;;  %v2667_v3 = vsel %vm668_vm1, %v2662_v58, %v2666_v59  ;;  %v2571_v10 = vsel %vm668_vm1, %v2566_v4, %v2570_v5 }
  0xf8   : > { %2068 = vrot.lane.b32.xlu0 %v2029_v18, %s4494_s6 }
  0xf9   : > { %v2691_v13 = vpop.permute.xlu1 %2690 }
  0xfa   : > { %2728 = vst.msk [vmem:[#allocation2 + $0x58] sm:$0xff] %vm2716_vm9, %v2691_v13  ;;  %v2675_v15 = vpop.permute.xlu0 %2674  ;;  %v4456_v13 = vld [vmem:[%s4555_s26 + $0x60] sm:$0xfe]  }
  0xfb   : > { %2720 = vst.msk [vmem:[#allocation2 + $0x18] sm:$0xff] %vm2716_vm9, %v2675_v15  ;;  %2263 = vrot.lane.b32.xlu1 %v4438_v11, %s4495_s7  ;;  %v2953_v11 = vsel %vm1102_vm0, %v2951_v8, %v2952_v12  ;;  %v2927_v18 = vrot.slane %v4456_v13, 1 }
  0xfc   : > { %2247 = vrot.lane.b32.xlu0 %v4439_v21, %s4495_s7  ;;  %v4458_v21 = vld [vmem:[%s4555_s26 + $0xcc] sm:$0xfe]  }
  0xfd   : > { %v2978_v19 = vpop.permute.xlu1 %2977  ;;  %v2954_v26 = vrot.slane %v4458_v21, 1 }
  0xfe   : > { %3016 = vst.msk [vmem:[#allocation2 + $0x50] sm:$0xff] %vm3005_vm10, %v2978_v19  ;;  %v2962_v23 = vpop.permute.xlu0 %2961  ;;  %v2928_v19 = vrot.slane %v4457_v14, 1 }
  0xff   : > { %3008 = vst.msk [vmem:[#allocation2 + $0x10] sm:$0xff] %vm3005_vm10, %v2962_v23  ;;  %2265 = vrot.lane.b32.xlu1 %v4440_v27, %s4495_s7  ;;  %v4459_v23 = vld [vmem:[%s4555_s26 + $0xd4] ss:$0 sps:$4 sm:$0x11]  }
 0x100   : > { %2249 = vrot.lane.b32.xlu0 %v4441_v33, %s4495_s7  ;;  %v2929_v25 = vsel %vm1102_vm0, %v2927_v18, %v2928_v19  ;;  %v2955_v27 = vrot.slane %v4459_v23, 1  ;;  %v4465_v33 = vld [vmem:[%s4555_s26 + $0x54] sm:$0xff]  }
 0x101   : > { %v886_v29 = vpop.permute.xlu1 %885  ;;  %483 = vst.msk [vmem:[#allocation2 + $0x38] sm:$0xff] %vm475_vm2, %v4465_v33 }
 0x102   : > { %922 = vst.msk [vmem:[#allocation2 + $0x60] sm:$0xff] %vm909_vm3, %v886_v29  ;;  %v870_v34 = vpop.permute.xlu0 %869  ;;  %v4461_v29 = vld [vmem:[%s4555_s26 + $0x74] ss:$0 sps:$4 sm:$0x11]   ;;  %v2956_v31 = vsel %vm1102_vm0, %v2954_v26, %v2955_v27 }
 0x103   : > { %914 = vst.msk [vmem:[#allocation2 + $0x20] sm:$0xff] %vm909_vm3, %v870_v34  ;;  %2696 = vrot.lane.b32.xlu1 %v2655_v55, %s4496_s8  ;;  %v2931_v34 = vrot.slane %v4461_v29, 1 }
 0x104   : > { %2680 = vrot.lane.b32.xlu0 %v2559_v61, %s4496_s8 }
 0x105   : > { %v2980_v48 = vpop.permute.xlu1 %2979  ;;  %v3032_v49 = vld [vmem:[#allocation2 + $0x50] sm:$0xff]  ;;  %v2932_v36 = vsel %vm1102_vm0, %v2930_v63, %v2931_v34 }
 0x106   : > { %3017 = vst.msk [vmem:[#allocation2 + $0x58] sm:$0xff] %vm3005_vm10, %v2980_v48  ;;  %v2964_v50 = vpop.permute.xlu0 %2963  ;;  %v3024_v51 = vld [vmem:[#allocation2 + $0x10] sm:$0xff]  ;;  %4170 = vmatprep.mubr.msk.bf16.mxu1 %vm3065_vm11, %v3032_v49 }
 0x107   : > { %3009 = vst.msk [vmem:[#allocation2 + $0x18] sm:$0xff] %vm3005_vm10, %v2964_v50  ;;  %4154 = vmatprep.mubr.msk.bf16.mxu0 %vm3065_vm11, %v3024_v51  ;;  %2698 = vrot.lane.b32.xlu1 %v2667_v3, %s4496_s8 }
 0x108   : > { %2682 = vrot.lane.b32.xlu0 %v2571_v10, %s4496_s8 }
 0x109   : > { %v888_v1 = vpop.permute.xlu1 %887 }
 0x10a   : > { %923 = vst.msk [vmem:[#allocation2 + $0x68] sm:$0xff] %vm909_vm3, %v888_v1  ;;  %v872_v7 = vpop.permute.xlu0 %871 }
 0x10b   : > { %915 = vst.msk [vmem:[#allocation2 + $0x28] sm:$0xff] %vm909_vm3, %v872_v7  ;;  %2985 = vrot.lane.b32.xlu1 %v2953_v11, %s4497_s9 }
 0x10c   : > { %2969 = vrot.lane.b32.xlu0 %v2929_v25, %s4497_s9 }
 0x10d   : > { %v1176_v15 = vpop.permute.xlu1 %1175  ;;  %v3033_v17 = vld [vmem:[#allocation2 + $0x58] sm:$0xff] }
 0x10e   : > { %v3025_v16 = vld [vmem:[#allocation2 + $0x18] sm:$0xff]  ;;  %1212 = vst.msk [vmem:[#allocation2 + $0x60] sm:$0xff] %vm1199_vm4, %v1176_v15  ;;  %4171 = vmatmul.mubr.msk.bf16.gmra.mrb[4].mxu1 %vm3065_vm11, %v3033_v17  ;;  %v1160_v20 = vpop.permute.xlu0 %1159 }
 0x10f   : > { %4155 = vmatmul.mubr.msk.bf16.gmra.mrb[4].mxu0 %vm3065_vm11, %v3025_v16  ;;  %1204 = vst.msk [vmem:[#allocation2 + $0x20] sm:$0xff] %vm1199_vm4, %v1160_v20  ;;  %2987 = vrot.lane.b32.xlu1 %v2956_v31, %s4497_s9 }
 0x110   : > { %2971 = vrot.lane.b32.xlu0 %v2932_v36, %s4497_s9  ;;  %v5210_v36 = vstv %s3279_s16 }
 0x111   : > { %v1178_v28 = vpop.permute.xlu1 %1177 }
 0x112   : > { %1213 = vst.msk [vmem:[#allocation2 + $0x68] sm:$0xff] %vm1199_vm4, %v1178_v28  ;;  %v1162_v32 = vpop.permute.xlu0 %1161 }
 0x113   : > { %1205 = vst.msk [vmem:[#allocation2 + $0x28] sm:$0xff] %vm1199_vm4, %v1162_v32 }
 0x115   : > { %v1357_v35 = vpop.permute.xlu1 %1356 }
 0x116   : > { %1393 = vst.msk [vmem:[#allocation2 + $0x60] sm:$0xff] %vm1380_vm5, %v1357_v35  ;;  %v1341_v37 = vpop.permute.xlu0 %1340 }
 0x117   : > { %1385 = vst.msk [vmem:[#allocation2 + $0x20] sm:$0xff] %vm1380_vm5, %v1341_v37  ;;  %v3298_v37 = vld [vmem:[%s5208_s23 + $0x90] sm:$0xff] }
 0x119   : > { %v1359_v38 = vpop.permute.xlu1 %1358 }
 0x11a   : > { %1394 = vst.msk [vmem:[#allocation2 + $0x68] sm:$0xff] %vm1380_vm5, %v1359_v38  ;;  %v1343_v39 = vpop.permute.xlu0 %1342  ;;  %v3282_v38 = vld [vmem:[%s5208_s23 + $0x10] sm:$0xff] }
 0x11b   : > { %1386 = vst.msk [vmem:[#allocation2 + $0x28] sm:$0xff] %vm1380_vm5, %v1343_v39  ;;  %v3296_v39 = vld [vmem:[%s5208_s23 + $0x80] sm:$0xff] }
 0x11d   : > { %v1790_v40 = vpop.permute.xlu1 %1789 }
 0x11e   : > { %1826 = vst.msk [vmem:[#allocation2 + $0x60] sm:$0xff] %vm1813_vm6, %v1790_v40  ;;  %v1774_v41 = vpop.permute.xlu0 %1773  ;;  %v5218_v40 = vld [vmem:[%s5364_s3] ss:$0 sm:$0xff] }
 0x11f   : > { %1818 = vst.msk [vmem:[#allocation2 + $0x20] sm:$0xff] %vm1813_vm6, %v1774_v41  ;;  %v3280_v41 = vld [vmem:[%s5208_s23] sm:$0xff] }
 0x121   : > { %v1792_v42 = vpop.permute.xlu1 %1791 }
 0x122   : > { %1827 = vst.msk [vmem:[#allocation2 + $0x68] sm:$0xff] %vm1813_vm6, %v1792_v42  ;;  %v1776_v43 = vpop.permute.xlu0 %1775  ;;  %v3299_v42 = vld [vmem:[%s5208_s23 + $0x98] sm:$0xff] }
 0x123   : > { %1819 = vst.msk [vmem:[#allocation2 + $0x28] sm:$0xff] %vm1813_vm6, %v1776_v43  ;;  %v3331_v43 = vmul.f32 %v5210_v36, %v3298_v37 }
 0x125   : > { %v2079_v44 = vpop.permute.xlu1 %2078 }
 0x126   : > { %2115 = vst.msk [vmem:[#allocation2 + $0x60] sm:$0xff] %vm2102_vm7, %v2079_v44  ;;  %v2063_v45 = vpop.permute.xlu0 %2062  ;;  %v3283_v44 = vld [vmem:[%s5208_s23 + $0x18] sm:$0xff] }
 0x127   : > { %2107 = vst.msk [vmem:[#allocation2 + $0x20] sm:$0xff] %vm2102_vm7, %v2063_v45  ;;  %v3297_v45 = vld [vmem:[%s5208_s23 + $0x88] sm:$0xff] }
 0x129   : > { %v2081_v46 = vpop.permute.xlu1 %2080 }
 0x12a   : > { %2116 = vst.msk [vmem:[#allocation2 + $0x68] sm:$0xff] %vm2102_vm7, %v2081_v46  ;;  %v2065_v47 = vpop.permute.xlu0 %2064  ;;  %v3315_v46 = vmul.f32 %v5210_v36, %v3282_v38 }
 0x12b   : > { %2108 = vst.msk [vmem:[#allocation2 + $0x28] sm:$0xff] %vm2102_vm7, %v2065_v47 }
 0x12d   : > { %v2260_v48 = vpop.permute.xlu1 %2259 }
 0x12e   : > { %2296 = vst.msk [vmem:[#allocation2 + $0x60] sm:$0xff] %vm2283_vm8, %v2260_v48  ;;  %v2244_v49 = vpop.permute.xlu0 %2243  ;;  %v3329_v48 = vmul.f32 %v5210_v36, %v3296_v39 }
 0x12f   : > { %2288 = vst.msk [vmem:[#allocation2 + $0x20] sm:$0xff] %vm2283_vm8, %v2244_v49  ;;  %v3281_v49 = vld [vmem:[%s5208_s23 + $0x8] sm:$0xff] }
 0x131   : > { %v2262_v50 = vpop.permute.xlu1 %2261 }
 0x132   : > { %2297 = vst.msk [vmem:[#allocation2 + $0x68] sm:$0xff] %vm2283_vm8, %v2262_v50  ;;  %v2246_v51 = vpop.permute.xlu0 %2245 }
 0x133   : > { %2289 = vst.msk [vmem:[#allocation2 + $0x28] sm:$0xff] %vm2283_vm8, %v2246_v51 }
 0x135   : > { %v2693_v52 = vpop.permute.xlu1 %2692 }
 0x136   : > { %2729 = vst.msk [vmem:[#allocation2 + $0x60] sm:$0xff] %vm2716_vm9, %v2693_v52  ;;  %v2677_v53 = vpop.permute.xlu0 %2676  ;;  %v3313_v52 = vmul.f32 %v5210_v36, %v3280_v41 }
 0x137   : > { %2721 = vst.msk [vmem:[#allocation2 + $0x20] sm:$0xff] %vm2716_vm9, %v2677_v53 }
 0x139   : > { %v2695_v54 = vpop.permute.xlu1 %2694 }
 0x13a   : > { %2730 = vst.msk [vmem:[#allocation2 + $0x68] sm:$0xff] %vm2716_vm9, %v2695_v54  ;;  %v2679_v55 = vpop.permute.xlu0 %2678  ;;  %v3332_v54 = vmul.f32 %v5210_v36, %v3299_v42 }
 0x13b   : > { %2722 = vst.msk [vmem:[#allocation2 + $0x28] sm:$0xff] %vm2716_vm9, %v2679_v55 }
 0x13d   : > { %v2982_v56 = vpop.permute.xlu1 %2981 }
 0x13e   : > { %3018 = vst.msk [vmem:[#allocation2 + $0x60] sm:$0xff] %vm3005_vm10, %v2982_v56  ;;  %v2966_v57 = vpop.permute.xlu0 %2965 }
 0x13f   : > { %3010 = vst.msk [vmem:[#allocation2 + $0x20] sm:$0xff] %vm3005_vm10, %v2966_v57 }
 0x141   : > { %v890_v58 = vpop.permute.xlu1 %889 }
 0x142   : > { %924 = vst.msk [vmem:[#allocation2 + $0x70] sm:$0xff] %vm909_vm3, %v890_v58  ;;  %v874_v60 = vpop.permute.xlu0 %873  ;;  %v3316_v58 = vmul.f32 %v5210_v36, %v3283_v44 }
 0x143   : > { %916 = vst.msk [vmem:[#allocation2 + $0x30] sm:$0xff] %vm909_vm3, %v874_v60  ;;  %v3330_v60 = vmul.f32 %v5210_v36, %v3297_v45 }
 0x145   : > { %v3034_v59 = vld [vmem:[#allocation2 + $0x60] sm:$0xff]  ;;  %v2984_v61 = vpop.permute.xlu1 %2983 }
 0x146   : > { %4174 = vmatprep.mubr.msk.bf16.mxu1 %vm3065_vm11, %v3034_v59  ;;  %v3026_v62 = vld [vmem:[#allocation2 + $0x20] sm:$0xff]  ;;  %3019 = vst.msk [vmem:[#allocation2 + $0x68] sm:$0xff] %vm3005_vm10, %v2984_v61  ;;  %v2968_v0 = vpop.permute.xlu0 %2967 }
 0x147   : > { %4158 = vmatprep.mubr.msk.bf16.mxu0 %vm3065_vm11, %v3026_v62  ;;  %3011 = vst.msk [vmem:[#allocation2 + $0x28] sm:$0xff] %vm3005_vm10, %v2968_v0 }
 0x149   : > { %v892_v1 = vpop.permute.xlu1 %891 }
 0x14a   : > { %925 = vst.msk [vmem:[#allocation2 + $0x78] sm:$0xff] %vm909_vm3, %v892_v1  ;;  %v876_v3 = vpop.permute.xlu0 %875 }
 0x14b   : > { %917 = vst.msk [vmem:[#allocation2 + $0x38] sm:$0xff] %vm909_vm3, %v876_v3 }
 0x14d   : > { %v3035_v2 = vld [vmem:[#allocation2 + $0x68] sm:$0xff]  ;;  %v1180_v4 = vpop.permute.xlu1 %1179 }
 0x14e   : > { %4175 = vmatmul.mubr.msk.bf16.gmra.mrb[8].mxu1 %vm3065_vm11, %v3035_v2  ;;  %1214 = vst.msk [vmem:[#allocation2 + $0x70] sm:$0xff] %vm1199_vm4, %v1180_v4  ;;  %v3027_v5 = vld [vmem:[#allocation2 + $0x28] sm:$0xff]  ;;  %v1164_v6 = vpop.permute.xlu0 %1163  ;;  %v3314_v2 = vmul.f32 %v5210_v36, %v3281_v49 }
 0x14f   : > { %4159 = vmatmul.mubr.msk.bf16.gmra.mrb[8].mxu0 %vm3065_vm11, %v3027_v5  ;;  %1206 = vst.msk [vmem:[#allocation2 + $0x30] sm:$0xff] %vm1199_vm4, %v1164_v6 }
 0x151   : > { %v1182_v7 = vpop.permute.xlu1 %1181 }
 0x152   : > { %1215 = vst.msk [vmem:[#allocation2 + $0x78] sm:$0xff] %vm1199_vm4, %v1182_v7  ;;  %v1166_v8 = vpop.permute.xlu0 %1165 }
 0x153   : > { %1207 = vst.msk [vmem:[#allocation2 + $0x38] sm:$0xff] %vm1199_vm4, %v1166_v8 }
 0x155   : > { %v1361_v9 = vpop.permute.xlu1 %1360 }
 0x156   : > { %1395 = vst.msk [vmem:[#allocation2 + $0x70] sm:$0xff] %vm1380_vm5, %v1361_v9  ;;  %v1345_v10 = vpop.permute.xlu0 %1344 }
 0x157   : > { %1387 = vst.msk [vmem:[#allocation2 + $0x30] sm:$0xff] %vm1380_vm5, %v1345_v10 }
 0x159   : > { %v1363_v12 = vpop.permute.xlu1 %1362 }
 0x15a   : > { %1396 = vst.msk [vmem:[#allocation2 + $0x78] sm:$0xff] %vm1380_vm5, %v1363_v12  ;;  %v1347_v13 = vpop.permute.xlu0 %1346 }
 0x15b   : > { %1388 = vst.msk [vmem:[#allocation2 + $0x38] sm:$0xff] %vm1380_vm5, %v1347_v13 }
 0x15d   : > { %v1794_v14 = vpop.permute.xlu1 %1793 }
 0x15e   : > { %1828 = vst.msk [vmem:[#allocation2 + $0x70] sm:$0xff] %vm1813_vm6, %v1794_v14  ;;  %v1778_v15 = vpop.permute.xlu0 %1777 }
 0x15f   : > { %1820 = vst.msk [vmem:[#allocation2 + $0x30] sm:$0xff] %vm1813_vm6, %v1778_v15 }
 0x161   : > { %v1796_v16 = vpop.permute.xlu1 %1795 }
 0x162   : > { %1829 = vst.msk [vmem:[#allocation2 + $0x78] sm:$0xff] %vm1813_vm6, %v1796_v16  ;;  %v1780_v17 = vpop.permute.xlu0 %1779 }
 0x163   : > { %1821 = vst.msk [vmem:[#allocation2 + $0x38] sm:$0xff] %vm1813_vm6, %v1780_v17 }
 0x165   : > { %v2083_v11 = vpop.permute.xlu1 %2082 }
 0x166   : > { %2117 = vst.msk [vmem:[#allocation2 + $0x70] sm:$0xff] %vm2102_vm7, %v2083_v11  ;;  %v2067_v18 = vpop.permute.xlu0 %2066 }
 0x167   : > { %2109 = vst.msk [vmem:[#allocation2 + $0x30] sm:$0xff] %vm2102_vm7, %v2067_v18 }
 0x169   : > { %v2085_v19 = vpop.permute.xlu1 %2084 }
 0x16a   : > { %2118 = vst.msk [vmem:[#allocation2 + $0x78] sm:$0xff] %vm2102_vm7, %v2085_v19  ;;  %v2069_v20 = vpop.permute.xlu0 %2068 }
 0x16b   : > { %2110 = vst.msk [vmem:[#allocation2 + $0x38] sm:$0xff] %vm2102_vm7, %v2069_v20 }
 0x16d   : > { %v2264_v21 = vpop.permute.xlu1 %2263 }
 0x16e   : > { %2298 = vst.msk [vmem:[#allocation2 + $0x70] sm:$0xff] %vm2283_vm8, %v2264_v21  ;;  %v2248_v23 = vpop.permute.xlu0 %2247 }
 0x16f   : > { %2290 = vst.msk [vmem:[#allocation2 + $0x30] sm:$0xff] %vm2283_vm8, %v2248_v23 }
 0x171   : > { %v2266_v24 = vpop.permute.xlu1 %2265 }
 0x172   : > { %2299 = vst.msk [vmem:[#allocation2 + $0x78] sm:$0xff] %vm2283_vm8, %v2266_v24  ;;  %v2250_v25 = vpop.permute.xlu0 %2249  ;;  %v3286_v24 = vld [vmem:[%s5208_s23 + $0x30] sm:$0xff] }
 0x173   : > { %2291 = vst.msk [vmem:[#allocation2 + $0x38] sm:$0xff] %vm2283_vm8, %v2250_v25  ;;  %v3302_v25 = vld [vmem:[%s5208_s23 + $0xb0] sm:$0xff] }
 0x175   : > { %v2697_v26 = vpop.permute.xlu1 %2696 }
 0x176   : > { %2731 = vst.msk [vmem:[#allocation2 + $0x70] sm:$0xff] %vm2716_vm9, %v2697_v26  ;;  %v2681_v27 = vpop.permute.xlu0 %2680  ;;  %v3284_v26 = vld [vmem:[%s5208_s23 + $0x20] sm:$0xff] }
 0x177   : > { %2723 = vst.msk [vmem:[#allocation2 + $0x30] sm:$0xff] %vm2716_vm9, %v2681_v27  ;;  %v3300_v27 = vld [vmem:[%s5208_s23 + $0xa0] sm:$0xff] }
 0x179   : > { %v2699_v22 = vpop.permute.xlu1 %2698 }
 0x17a   : > { %2732 = vst.msk [vmem:[#allocation2 + $0x78] sm:$0xff] %vm2716_vm9, %v2699_v22  ;;  %v2683_v28 = vpop.permute.xlu0 %2682  ;;  %v3287_v22 = vld [vmem:[%s5208_s23 + $0x38] sm:$0xff] }
 0x17b   : > { %2724 = vst.msk [vmem:[#allocation2 + $0x38] sm:$0xff] %vm2716_vm9, %v2683_v28  ;;  %v3303_v28 = vld [vmem:[%s5208_s23 + $0xb8] sm:$0xff]  ;;  %v3320_v42 = vmul.f32 %v5210_v36, %v3287_v22 }
 0x17d   : > { %v2986_v29 = vpop.permute.xlu1 %2985 }
 0x17e   : > { %3020 = vst.msk [vmem:[#allocation2 + $0x70] sm:$0xff] %vm3005_vm10, %v2986_v29  ;;  %v2970_v30 = vpop.permute.xlu0 %2969  ;;  %v3319_v29 = vmul.f32 %v5210_v36, %v3286_v24 }
 0x17f   : > { %3012 = vst.msk [vmem:[#allocation2 + $0x30] sm:$0xff] %vm3005_vm10, %v2970_v30  ;;  %v3335_v30 = vmul.f32 %v5210_v36, %v3302_v25 }
 0x181   : > { %v2988_v31 = vpop.permute.xlu1 %2987 }
 0x182   : > { %3021 = vst.msk [vmem:[#allocation2 + $0x78] sm:$0xff] %vm3005_vm10, %v2988_v31  ;;  %v2972_v63 = vpop.permute.xlu0 %2971  ;;  %v3285_v31 = vld [vmem:[%s5208_s23 + $0x28] sm:$0xff] }
 0x183   : > { %3013 = vst.msk [vmem:[#allocation2 + $0x38] sm:$0xff] %vm3005_vm10, %v2972_v63  ;;  %v3301_v63 = vld [vmem:[%s5208_s23 + $0xa8] sm:$0xff] }
 0x184   : > { %v3334_v49 = vmul.f32 %v5210_v36, %v3301_v63 }
 0x185   : > { %v3036_v32 = vld [vmem:[#allocation2 + $0x70] sm:$0xff] }
 0x186   : > { %4178 = vmatprep.mubr.msk.bf16.mxu1 %vm3065_vm11, %v3036_v32  ;;  %v3028_v33 = vld [vmem:[#allocation2 + $0x30] sm:$0xff] }
 0x187   : > { %4162 = vmatprep.mubr.msk.bf16.mxu0 %vm3065_vm11, %v3028_v33 }
 0x189   : > { %v3037_v34 = vld [vmem:[#allocation2 + $0x78] sm:$0xff] }
 0x18a   : > { %4179 = vmatmul.mubr.msk.bf16.gmra.mrb[12].mxu1 %vm3065_vm11, %v3037_v34  ;;  %v3029_v35 = vld [vmem:[#allocation2 + $0x38] sm:$0xff]  ;;  %v3317_v34 = vmul.f32 %v5210_v36, %v3284_v26 }
 0x18b   : > { %4163 = vmatmul.mubr.msk.bf16.gmra.mrb[12].mxu0 %vm3065_vm11, %v3029_v35  ;;  %v3333_v35 = vmul.f32 %v5210_v36, %v3300_v27 }
 0x1a1   : > { %v4168_v47 = vpop.f32.mrb[0].mxu1 }
 0x1a2   : > { %v4152_v50 = vpop.f32.mrb[0].mxu0  ;;  %v3225_v51 = vadd.f32 %v4168_v47, %v5218_v40  ;;  %v3216_v53 = vpop.f32.mrb[1].mxu1 }
 0x1a3   : > { %v3161_v55 = vadd.f32 %v4152_v50, %v5218_v40  ;;  %v3152_v56 = vpop.f32.mrb[1].mxu0  ;;  %v3217_v57 = vadd.f32 %v5218_v40, %v3216_v53  ;;  %v4169_v59 = vpop.f32.mrb[2].mxu1 }
 0x1a4   : > { %v3363_v61 = vadd.f32 %v3331_v43, %v3225_v51  ;;  %v3153_v62 = vadd.f32 %v5218_v40, %v3152_v56  ;;  %v4153_v0 = vpop.f32.mrb[2].mxu0  ;;  %v3228_v1 = vadd.f32 %v4169_v59, %v5218_v40  ;;  %v3219_v3 = vpop.f32.mrb[3].mxu1  ;;  %v3336_v43 = vmul.f32 %v5210_v36, %v3303_v28  ;;  %v3289_v28 = vld [vmem:[%s5208_s23 + $0x48] sm:$0xff] }
 0x1a5   : > { %v3347_v4 = vadd.f32 %v3315_v46, %v3161_v55  ;;  %v3361_v5 = vadd.f32 %v3329_v48, %v3217_v57  ;;  %v3164_v6 = vadd.f32 %v4153_v0, %v5218_v40  ;;  %v3155_v7 = vpop.f32.mrb[3].mxu0  ;;  %v3220_v8 = vadd.f32 %v5218_v40, %v3219_v3 }
 0x1a6   : > { %v3395_v9 = vmax.f32 %v3363_v61, 0.0  ;;  %v3345_v10 = vadd.f32 %v3313_v52, %v3153_v62  ;;  %v3364_v12 = vadd.f32 %v3332_v54, %v3228_v1  ;;  %v3156_v13 = vadd.f32 %v5218_v40, %v3155_v7 }
 0x1a7   : > { %v3379_v14 = vmax.f32 %v3347_v4, 0.0  ;;  %v3393_v15 = vmax.f32 %v3361_v5, 0.0  ;;  %v3348_v16 = vadd.f32 %v3316_v58, %v3164_v6  ;;  %v3362_v17 = vadd.f32 %v3330_v60, %v3220_v8 }
 0x1a8   : > { %3427 = vst [vmem:[%s5243_s28 + $0x90] sm:$0xff] %v3395_v9  ;;  %v3377_v11 = vmax.f32 %v3345_v10, 0.0  ;;  %v3396_v18 = vmax.f32 %v3364_v12, 0.0  ;;  %v3346_v19 = vadd.f32 %v3314_v2, %v3156_v13  ;;  %v3318_v48 = vmul.f32 %v5210_v36, %v3285_v31  ;;  %v3306_v9 = vld [vmem:[%s5208_s23 + $0xd0] sm:$0xff]  ;;  %v3304_v10 = vld [vmem:[%s5208_s23 + $0xc0] sm:$0xff]  ;;  %v3307_v12 = vld [vmem:[%s5208_s23 + $0xd8] sm:$0xff] }
 0x1a9   : > { %3411 = vst [vmem:[%s5243_s28 + $0x10] sm:$0xff] %v3379_v14  ;;  %3425 = vst [vmem:[%s5243_s28 + $0x80] sm:$0xff] %v3393_v15  ;;  %v3380_v20 = vmax.f32 %v3348_v16, 0.0  ;;  %v3394_v21 = vmax.f32 %v3362_v17, 0.0  ;;  %v3339_v13 = vmul.f32 %v5210_v36, %v3306_v9  ;;  %v3305_v14 = vld [vmem:[%s5208_s23 + $0xc8] sm:$0xff]  ;;  %v3290_v15 = vld [vmem:[%s5208_s23 + $0x50] sm:$0xff]  ;;  %v3337_v17 = vmul.f32 %v5210_v36, %v3304_v10 }
 0x1aa   : > { %3409 = vst [vmem:[%s5243_s28] sm:$0xff] %v3377_v11  ;;  %3428 = vst [vmem:[%s5243_s28 + $0x98] sm:$0xff] %v3396_v18  ;;  %v3378_v23 = vmax.f32 %v3346_v19, 0.0  ;;  %v3288_v18 = vld [vmem:[%s5208_s23 + $0x40] sm:$0xff]  ;;  %v3338_v25 = vmul.f32 %v5210_v36, %v3305_v14  ;;  %v3323_v26 = vmul.f32 %v5210_v36, %v3290_v15  ;;  %v3293_v9 = vld [vmem:[%s5208_s23 + $0x68] sm:$0xff] }
 0x1ab   : > { %3412 = vst [vmem:[%s5243_s28 + $0x18] sm:$0xff] %v3380_v20  ;;  %3426 = vst [vmem:[%s5243_s28 + $0x88] sm:$0xff] %v3394_v21  ;;  %v3340_v20 = vmul.f32 %v5210_v36, %v3307_v12  ;;  %v3321_v31 = vmul.f32 %v5210_v36, %v3288_v18 }
 0x1ac   : > { %3410 = vst [vmem:[%s5243_s28 + $0x8] sm:$0xff] %v3378_v23  ;;  %v3291_v23 = vld [vmem:[%s5208_s23 + $0x58] sm:$0xff] }
 0x1e1   : > { %v4172_v33 = vpop.f32.mrb[4].mxu1 }
 0x1e2   : > { %v4156_v32 = vpop.f32.mrb[4].mxu0  ;;  %v3241_v38 = vadd.f32 %v4172_v33, %v5218_v40  ;;  %v3232_v41 = vpop.f32.mrb[5].mxu1 }
 0x1e3   : > { %v3177_v37 = vadd.f32 %v4156_v32, %v5218_v40  ;;  %v3168_v39 = vpop.f32.mrb[5].mxu0  ;;  %v3233_v45 = vadd.f32 %v5218_v40, %v3232_v41  ;;  %v4173_v47 = vpop.f32.mrb[6].mxu1 }
 0x1e4   : > { %v3169_v44 = vadd.f32 %v5218_v40, %v3168_v39  ;;  %v4157_v46 = vpop.f32.mrb[6].mxu0  ;;  %v3367_v51 = vadd.f32 %v3335_v30, %v3241_v38  ;;  %v3244_v53 = vadd.f32 %v4173_v47, %v5218_v40  ;;  %v3235_v55 = vpop.f32.mrb[7].mxu1 }
 0x1e5   : > { %v3351_v50 = vadd.f32 %v3319_v29, %v3177_v37  ;;  %v3180_v52 = vadd.f32 %v4157_v46, %v5218_v40  ;;  %v3171_v54 = vpop.f32.mrb[7].mxu0  ;;  %v3365_v57 = vadd.f32 %v3333_v35, %v3233_v45  ;;  %v3236_v59 = vadd.f32 %v5218_v40, %v3235_v55 }
 0x1e6   : > { %v3349_v56 = vadd.f32 %v3317_v34, %v3169_v44  ;;  %v3172_v58 = vadd.f32 %v5218_v40, %v3171_v54  ;;  %v3399_v61 = vmax.f32 %v3367_v51, 0.0  ;;  %v3368_v0 = vadd.f32 %v3336_v43, %v3244_v53 }
 0x1e7   : > { %v3383_v60 = vmax.f32 %v3351_v50, 0.0  ;;  %v3352_v62 = vadd.f32 %v3320_v42, %v3180_v52  ;;  %v3397_v2 = vmax.f32 %v3365_v57, 0.0  ;;  %v3366_v4 = vadd.f32 %v3334_v49, %v3236_v59  ;;  %v3308_v59 = vld [vmem:[%s5208_s23 + $0xe0] sm:$0xff] }
 0x1e8   : > { %v3381_v1 = vmax.f32 %v3349_v56, 0.0  ;;  %v3350_v3 = vadd.f32 %v3318_v48, %v3172_v58  ;;  %3431 = vst [vmem:[%s5243_s28 + $0xb0] sm:$0xff] %v3399_v61  ;;  %v3400_v6 = vmax.f32 %v3368_v0, 0.0  ;;  %v3324_v37 = vmul.f32 %v5210_v36, %v3291_v23  ;;  %v3310_v58 = vld [vmem:[%s5208_s23 + $0xf0] sm:$0xff]  ;;  %v3311_v61 = vld [vmem:[%s5208_s23 + $0xf8] sm:$0xff]  ;;  %v3292_v0 = vld [vmem:[%s5208_s23 + $0x60] sm:$0xff] }
 0x1e9   : > { %3415 = vst [vmem:[%s5243_s28 + $0x30] sm:$0xff] %v3383_v60  ;;  %v3384_v5 = vmax.f32 %v3352_v62, 0.0  ;;  %3429 = vst [vmem:[%s5243_s28 + $0xa0] sm:$0xff] %v3397_v2  ;;  %v3398_v8 = vmax.f32 %v3366_v4, 0.0  ;;  %v3322_v43 = vmul.f32 %v5210_v36, %v3289_v28  ;;  %v3294_v60 = vld [vmem:[%s5208_s23 + $0x70] sm:$0xff]  ;;  %v3343_v62 = vmul.f32 %v5210_v36, %v3310_v58  ;;  %v3295_v4 = vld [vmem:[%s5208_s23 + $0x78] sm:$0xff] }
 0x1ea   : > { %3413 = vst [vmem:[%s5243_s28 + $0x20] sm:$0xff] %v3381_v1  ;;  %v3382_v7 = vmax.f32 %v3350_v3, 0.0  ;;  %3432 = vst [vmem:[%s5243_s28 + $0xb8] sm:$0xff] %v3400_v6  ;;  %v3309_v1 = vld [vmem:[%s5208_s23 + $0xe8] sm:$0xff]  ;;  %v3341_v3 = vmul.f32 %v5210_v36, %v3308_v59  ;;  %v3325_v12 = vmul.f32 %v5210_v36, %v3292_v0  ;;  %v3328_v18 = vmul.f32 %v5210_v36, %v3295_v4 }
 0x1eb   : > { %3416 = vst [vmem:[%s5243_s28 + $0x38] sm:$0xff] %v3384_v5  ;;  %3430 = vst [vmem:[%s5243_s28 + $0xa8] sm:$0xff] %v3398_v8  ;;  %v3327_v5 = vmul.f32 %v5210_v36, %v3294_v60  ;;  %v3344_v8 = vmul.f32 %v5210_v36, %v3311_v61  ;;  %v3342_v15 = vmul.f32 %v5210_v36, %v3309_v1 }
 0x1ec   : > { %3414 = vst [vmem:[%s5243_s28 + $0x28] sm:$0xff] %v3382_v7 }
 0x221   : > { %v4176_v16 = vpop.f32.mrb[8].mxu1 }
 0x222   : > { %v3257_v11 = vadd.f32 %v4176_v16, %v5218_v40  ;;  %v3248_v19 = vpop.f32.mrb[9].mxu1  ;;  %v4160_v30 = vpop.f32.mrb[8].mxu0 }
 0x223   : > { %v3249_v21 = vadd.f32 %v5218_v40, %v3248_v19  ;;  %v4177_v24 = vpop.f32.mrb[10].mxu1  ;;  %v3193_v33 = vadd.f32 %v4160_v30, %v5218_v40  ;;  %v3184_v35 = vpop.f32.mrb[9].mxu0 }
 0x224   : > { %v3371_v27 = vadd.f32 %v3339_v13, %v3257_v11  ;;  %v3260_v22 = vadd.f32 %v4177_v24, %v5218_v40  ;;  %v3251_v29 = vpop.f32.mrb[11].mxu1  ;;  %v3185_v39 = vadd.f32 %v5218_v40, %v3184_v35  ;;  %v4161_v42 = vpop.f32.mrb[10].mxu0 }
 0x225   : > { %v3369_v63 = vadd.f32 %v3337_v17, %v3249_v21  ;;  %v3252_v32 = vadd.f32 %v5218_v40, %v3251_v29  ;;  %v3355_v45 = vadd.f32 %v3323_v26, %v3193_v33  ;;  %v3196_v46 = vadd.f32 %v4161_v42, %v5218_v40  ;;  %v3187_v48 = vpop.f32.mrb[11].mxu0 }
 0x226   : > { %v3403_v34 = vmax.f32 %v3371_v27, 0.0  ;;  %v3372_v38 = vadd.f32 %v3340_v20, %v3260_v22  ;;  %v3353_v49 = vadd.f32 %v3321_v31, %v3185_v39  ;;  %v3188_v50 = vadd.f32 %v5218_v40, %v3187_v48 }
 0x227   : > { %v3401_v41 = vmax.f32 %v3369_v63, 0.0  ;;  %v3370_v44 = vadd.f32 %v3338_v25, %v3252_v32  ;;  %v3387_v52 = vmax.f32 %v3355_v45, 0.0  ;;  %v3356_v53 = vadd.f32 %v3324_v37, %v3196_v46 }
 0x228   : > { %3435 = vst [vmem:[%s5243_s28 + $0xd0] sm:$0xff] %v3403_v34  ;;  %v3404_v47 = vmax.f32 %v3372_v38, 0.0  ;;  %v3385_v54 = vmax.f32 %v3353_v49, 0.0  ;;  %v3354_v55 = vadd.f32 %v3322_v43, %v3188_v50  ;;  %v3326_v25 = vmul.f32 %v5210_v36, %v3293_v9 }
 0x229   : > { %3433 = vst [vmem:[%s5243_s28 + $0xc0] sm:$0xff] %v3401_v41  ;;  %v3402_v51 = vmax.f32 %v3370_v44, 0.0  ;;  %3419 = vst [vmem:[%s5243_s28 + $0x50] sm:$0xff] %v3387_v52  ;;  %v3388_v56 = vmax.f32 %v3356_v53, 0.0 }
 0x22a   : > { %3436 = vst [vmem:[%s5243_s28 + $0xd8] sm:$0xff] %v3404_v47  ;;  %3417 = vst [vmem:[%s5243_s28 + $0x40] sm:$0xff] %v3385_v54  ;;  %v3386_v57 = vmax.f32 %v3354_v55, 0.0 }
 0x22b   : > { %3434 = vst [vmem:[%s5243_s28 + $0xc8] sm:$0xff] %v3402_v51  ;;  %3420 = vst [vmem:[%s5243_s28 + $0x58] sm:$0xff] %v3388_v56 }
 0x22c   : > { %3418 = vst [vmem:[%s5243_s28 + $0x48] sm:$0xff] %v3386_v57 }
 0x25d   : > { %v4180_v2 = vpop.f32.mrb[12].mxu1 }
 0x25e   : > { %v3273_v6 = vadd.f32 %v4180_v2, %v5218_v40  ;;  %v3264_v7 = vpop.f32.mrb[13].mxu1  ;;  %v4164_v10 = vpop.f32.mrb[12].mxu0 }
 0x25f   : > { %v3265_v13 = vadd.f32 %v5218_v40, %v3264_v7  ;;  %v4181_v14 = vpop.f32.mrb[14].mxu1  ;;  %v3209_v16 = vadd.f32 %v4164_v10, %v5218_v40  ;;  %v3200_v11 = vpop.f32.mrb[13].mxu0 }
 0x260   : > { %v3375_v17 = vadd.f32 %v3343_v62, %v3273_v6  ;;  %v3276_v19 = vadd.f32 %v4181_v14, %v5218_v40  ;;  %v3267_v20 = vpop.f32.mrb[15].mxu1  ;;  %v3201_v21 = vadd.f32 %v5218_v40, %v3200_v11  ;;  %v4165_v24 = vpop.f32.mrb[14].mxu0 }
 0x261   : > { %v3373_v23 = vadd.f32 %v3341_v3, %v3265_v13  ;;  %v3268_v26 = vadd.f32 %v5218_v40, %v3267_v20  ;;  %v3359_v27 = vadd.f32 %v3327_v5, %v3209_v16  ;;  %v3212_v28 = vadd.f32 %v4165_v24, %v5218_v40  ;;  %v3203_v30 = vpop.f32.mrb[15].mxu0 }
 0x262   : > { %v3407_v22 = vmax.f32 %v3375_v17, 0.0  ;;  %v3376_v29 = vadd.f32 %v3344_v8, %v3276_v19  ;;  %v3357_v31 = vadd.f32 %v3325_v12, %v3201_v21  ;;  %v3204_v32 = vadd.f32 %v5218_v40, %v3203_v30 }
 0x263   : > { %v3405_v63 = vmax.f32 %v3373_v23, 0.0  ;;  %v3374_v33 = vadd.f32 %v3342_v15, %v3268_v26  ;;  %v3391_v36 = vmax.f32 %v3359_v27, 0.0  ;;  %v3360_v34 = vadd.f32 %v3328_v18, %v3212_v28 }
 0x264   : > { %3439 = vst [vmem:[%s5243_s28 + $0xf0] sm:$0xff] %v3407_v22  ;;  %v3408_v35 = vmax.f32 %v3376_v29, 0.0  ;;  %v3389_v37 = vmax.f32 %v3357_v31, 0.0  ;;  %v3358_v38 = vadd.f32 %v3326_v25, %v3204_v32 }
 0x265   : > { %3437 = vst [vmem:[%s5243_s28 + $0xe0] sm:$0xff] %v3405_v63  ;;  %v3406_v39 = vmax.f32 %v3374_v33, 0.0  ;;  %3423 = vst [vmem:[%s5243_s28 + $0x70] sm:$0xff] %v3391_v36  ;;  %v3392_v41 = vmax.f32 %v3360_v34, 0.0 }
 0x266   : > { %3440 = vst [vmem:[%s5243_s28 + $0xf8] sm:$0xff] %v3408_v35  ;;  %3421 = vst [vmem:[%s5243_s28 + $0x60] sm:$0xff] %v3389_v37  ;;  %v3390_v42 = vmax.f32 %v3358_v38, 0.0 }
 0x267   : > { %3438 = vst [vmem:[%s5243_s28 + $0xe8] sm:$0xff] %v3406_v39  ;;  %3424 = vst [vmem:[%s5243_s28 + $0x78] sm:$0xff] %v3392_v41 }
 0x268   : > { %3422 = vst [vmem:[%s5243_s28 + $0x68] sm:$0xff] %v3390_v42 }
 0x269 PF: > { %s16_s22 = sadd.s32 1, %s4488_s22   ;;  %s5367_s20 = smov %s4484_s21 }
 0x26a   : > { %p13_p5 = scmp.ge.s32.totalorder %s16_s22, 4   ;;  %s5368_s21 = smov %s5370_s0 }
 0x26c   :  { %15 = sbr.rel (!%p13_p5) target bundleno = 2 (0x2), region = 82 }

</bundles_post_ra>
